<compile_context>
chip_gen: v7x
topology: tpu7x:2x2x1
jax: 0.10.0
libtpu: 0.0.40
codegen_flags: <defaults>
</compile_context>

<pallas_src>
import functools

import jax
import jax.numpy as jnp
import numpy as np
from jax.experimental import pallas as pl
from jax.experimental.pallas import tpu as pltpu

LANE = 128      # TPU lane width; class and feature dims padded to multiples.
SUBLANE = 8     # batch dim padded to a full sublane group.


def _round_up(x, m):
    return ((x + m - 1) // m) * m


# ----------------------------------------------------------------------------
# Fused kernel: conv-stem (matmul + bias + ReLU + GAP)  +  LoRA particle head
# (hoisted base matmul, block-diagonal delta matmul)  +  softmax / entropy /
# cross-particle statistics.  Single grid step, single lane-dense output slab.
# ----------------------------------------------------------------------------
def _fused_svgd_kernel(patches_ref, sw_ref, sb_ref, w0t_ref, bias_ref,
                       a_ref, bblk_ref, out_ref, *, batch, hw, num_p, ncp):
    # ---- frozen backbone stem: one MXU pass over all im2col rows ----------
    acts = jnp.dot(patches_ref[...], sw_ref[...],
                   preferred_element_type=jnp.float32)            # [BP*hw, FP]
    acts = jnp.maximum(acts + sb_ref[...], 0.0)
    fp = acts.shape[-1]
    # fused global-average-pool: reshape + sublane reduction (XLU, hides under MXU)
    feat = jnp.sum(acts.reshape(batch, hw, fp), axis=1) * jnp.float32(1.0 / hw)

    # ---- LoRA particle head ------------------------------------------------
    featb = feat.astype(jnp.bfloat16)                              # [BP, FP]
    # particle-independent base logits: computed once, reused by every particle
    base = jnp.dot(featb, w0t_ref[...],
                   preferred_element_type=jnp.float32)             # [BP, NCP]
    base = base + bias_ref[...]          # padded classes carry a -1e30 bias
    # all particles' LoRA first stage in one MXU pass: [BP,FP] x [FP, P*r]
    xa = jnp.dot(featb, a_ref[...],
                 preferred_element_type=jnp.float32)               # [BP, P*r] f32
    # all particles' second stage in ONE MXU pass against a block-diagonal
    # [P*r, P*NCP] matrix (LoRA scaling already folded in at init time).
    # xa stays f32 so the cross-particle std isn't dominated by bf16 rounding.
    delta_all = jnp.dot(xa, bblk_ref[...],
                        preferred_element_type=jnp.float32)        # [BP, P*NCP]

    inv_p = jnp.float32(1.0 / num_p)
    logits_sum = None
    ent_sum = None
    softs = []
    for p in range(num_p):                   # static & small: fully unrolled
        logits = base + delta_all[:, p * ncp:(p + 1) * ncp]
        # stable softmax; padded lanes (logits ~ -1e30) underflow to exactly 0
        m = jnp.max(logits, axis=-1, keepdims=True)
        e = jnp.exp(logits - m)
        denom = jnp.sum(e, axis=-1, keepdims=True)
        soft = e * pl.reciprocal(denom, approx=True)
        # entropy via log-softmax: one EUP log per row instead of per element
        log_soft = (logits - m) - jnp.log(denom)
        ent = -jnp.sum(soft * log_soft, axis=-1, keepdims=True)    # [BP, 1]
        softs.append(soft)
        logits_sum = logits if logits_sum is None else logits_sum + logits
        ent_sum = ent if ent_sum is None else ent_sum + ent

    soft_sum = softs[0]
    for s in softs[1:]:
        soft_sum = soft_sum + s
    soft_mean = soft_sum * inv_p

    # unbiased (ddof=1) std across particles, two-pass form (no cancellation).
    # TODO(synk): num_p == 1 returns std = 0 where ddof=1 is undefined (torch
    # would give NaN) -- guarded here, documented rather than faked.
    var = jnp.zeros_like(soft_mean)
    for s in softs:
        d = s - soft_mean
        var = var + d * d
    inv_pm1 = jnp.float32(1.0 / (num_p - 1)) if num_p > 1 else jnp.float32(0.0)
    std = jnp.sqrt(var * inv_pm1)
    ent_b = jnp.broadcast_to(ent_sum * inv_p, (batch, ncp))

    # single lane/sublane-dense output slab [BP, 4*NCP]: four aligned 128-lane
    # slices of one output (one writeback DMA, no masked stores).
    out_ref[:, 0 * ncp:1 * ncp] = logits_sum * inv_p
    out_ref[:, 1 * ncp:2 * ncp] = soft_mean
    out_ref[:, 2 * ncp:3 * ncp] = std
    out_ref[:, 3 * ncp:4 * ncp] = ent_b


# ----------------------------------------------------------------------------
# One-time parameter preparation (all padding / casts / packing hoisted here)
# ----------------------------------------------------------------------------
def prepare_params(params, *, num_classes):
    conv_w, conv_b = params["conv_w"], params["conv_b"]
    w0, bias = params["w0"], params["bias"]
    lora_a, lora_b = params["lora_a"], params["lora_b"]
    scaling = float(params["scaling"])

    F, C = conv_w.shape[0], conv_w.shape[1]
    K = C * 9
    KP = _round_up(K, 32)                         # im2col contraction pad
    FP = _round_up(max(F, LANE), LANE)            # lane-dense feature dim
    NC = num_classes
    NCP = _round_up(max(NC, LANE), LANE)          # lane-dense class dim
    P, R, _ = lora_a.shape

    sw = jnp.zeros((KP, FP), jnp.bfloat16).at[:K, :F].set(
        conv_w.reshape(F, K).T.astype(jnp.bfloat16))
    sb = jnp.zeros((1, FP), jnp.float32).at[0, :F].set(conv_b.astype(jnp.float32))
    w0t = jnp.zeros((FP, NCP), jnp.bfloat16).at[:F, :NC].set(
        w0.T.astype(jnp.bfloat16))
    # keep padded-class bias large-finite (NOT -inf) so log-softmax on padded
    # lanes stays finite and 0 * log_soft never NaNs the entropy.
    bias_p = jnp.full((1, NCP), -1e30, jnp.float32).at[0, :NC].set(
        bias.astype(jnp.float32))
    # [FP, P*r]: column p*R+r holds A_p[r, :]
    a_all = jnp.zeros((FP, P * R), jnp.bfloat16).at[:F, :].set(
        lora_a.transpose(2, 0, 1).reshape(F, P * R).astype(jnp.bfloat16))
    # block-diagonal lane-dense B packing, LoRA scaling folded in once.
    bblk = jnp.zeros((P * R, P * NCP), jnp.bfloat16)
    for p in range(P):
        bblk = bblk.at[p * R:(p + 1) * R, p * NCP:p * NCP + NC].set(
            (scaling * lora_b[p].T).astype(jnp.bfloat16))

    prepped = dict(sw=sw, sb=sb, w0t=w0t, bias=bias_p, a_all=a_all, bblk=bblk)
    cfg = dict(K=K, KP=KP, F=F, FP=FP, NC=NC, NCP=NCP, P=P, R=R)
    return jax.tree_util.tree_map(jnp.asarray, prepped), cfg


# ----------------------------------------------------------------------------
# Glue: im2col for the 3x3 "same" conv stem (NCHW, stride 1, pad 1)
# ----------------------------------------------------------------------------
def im2col_3x3(x):
    # TODO(synk): at production H*W this wrapper-side im2col inflates stem HBM
    # traffic ~10x; move it in-kernel (DMA the padded image once and build the
    # 9 shifted views via static slices into a VMEM patch buffer).
    B, C, H, W = x.shape
    xp = jnp.pad(x, ((0, 0), (0, 0), (1, 1), (1, 1)))
    cols = []
    for dh in range(3):
        for dw in range(3):
            cols.append(xp[:, :, dh:dh + H, dw:dw + W])            # [B, C, H, W]
    p = jnp.stack(cols, axis=2)                                    # [B, C, 9, H, W]
    return p.transpose(0, 3, 4, 1, 2).reshape(B * H * W, C * 9)    # [B*H*W, C*9]


# ----------------------------------------------------------------------------
# Forward factory: jitted wrapper around the single fused pallas_call
# ----------------------------------------------------------------------------
def make_forward(prepped, cfg):
    K, KP, FP, NC, NCP, P, R = (cfg["K"], cfg["KP"], cfg["FP"], cfg["NC"],
                                cfg["NCP"], cfg["P"], cfg["R"])

    @jax.jit
    def _forward(image, sw, sb, w0t, bias, a_all, bblk):
        B, C, H, W = image.shape
        hw = H * W
        BP = _round_up(max(B, SUBLANE), SUBLANE)   # sublane-dense batch
        if BP != B:
            image = jnp.pad(image, ((0, BP - B), (0, 0), (0, 0), (0, 0)))
        patches = im2col_3x3(image.astype(jnp.float32))            # [BP*hw, K]
        patches = jnp.pad(patches, ((0, 0), (0, KP - K))).astype(jnp.bfloat16)
        M = BP * hw

        kernel = functools.partial(_fused_svgd_kernel, batch=BP, hw=hw,
                                   num_p=P, ncp=NCP)
        # Single grid step: everything fits comfortably in VMEM at these sizes.
        # TODO(synk): for production batch/H*W add a leading "parallel" grid
        # axis over row/batch tiles so both v7x TensorCores are used and the
        # working set stays inside v7x's 64 MiB VMEM.
        slab = pl.pallas_call(
            kernel,
            out_shape=jax.ShapeDtypeStruct((BP, 4 * NCP), jnp.float32),
            grid=(1,),
            in_specs=[
                pl.BlockSpec((M, KP), lambda i: (0, 0)),
                pl.BlockSpec((KP, FP), lambda i: (0, 0)),
                pl.BlockSpec((1, FP), lambda i: (0, 0)),
                pl.BlockSpec((FP, NCP), lambda i: (0, 0)),
                pl.BlockSpec((1, NCP), lambda i: (0, 0)),
                pl.BlockSpec((FP, P * R), lambda i: (0, 0)),
                pl.BlockSpec((P * R, P * NCP), lambda i: (0, 0)),
            ],
            out_specs=pl.BlockSpec((BP, 4 * NCP), lambda i: (0, 0)),
            compiler_params=pltpu.CompilerParams(
                dimension_semantics=("arbitrary",)),
        )(patches, sw, sb, w0t, bias, a_all, bblk)

        logits_mean = slab[:B, 0 * NCP:0 * NCP + NC]
        soft_mean = slab[:B, 1 * NCP:1 * NCP + NC]
        soft_std = slab[:B, 2 * NCP:2 * NCP + NC]
        ent_mean = slab[:B, 3 * NCP]
        return logits_mean, ent_mean, soft_mean, soft_std

    def forward(image, return_entropy=True):
        logits_mean, ent_mean, soft_mean, soft_std = _forward(
            image, prepped["sw"], prepped["sb"], prepped["w0t"],
            prepped["bias"], prepped["a_all"], prepped["bblk"])
        if return_entropy:
            return logits_mean, ent_mean, soft_mean, soft_std
        return logits_mean

    return forward


# ----------------------------------------------------------------------------
# Pure-JAX reference (f32) for the correctness check
# ----------------------------------------------------------------------------
def reference_forward(image, params):
    B, C, H, W = image.shape
    F = params["conv_w"].shape[0]
    patches = im2col_3x3(image.astype(jnp.float32))
    wmat = params["conv_w"].reshape(F, C * 9).T
    fmap = jnp.maximum(patches @ wmat + params["conv_b"][None, :], 0.0)
    feat = fmap.reshape(B, H * W, F).mean(axis=1)

    P = params["lora_a"].shape[0]
    logits_l, soft_l, ent_l = [], [], []
    for p in range(P):
        w_eff = params["w0"] + params["scaling"] * params["lora_b"][p] @ params["lora_a"][p]
        l = feat @ w_eff.T + params["bias"][None, :]
        s = jax.nn.softmax(l, axis=1)
        logits_l.append(l)
        soft_l.append(s)
        ent_l.append(-(s * jnp.log(s + 1e-8)).sum(1))
    logits = jnp.stack(logits_l)
    soft = jnp.stack(soft_l)
    ent = jnp.stack(ent_l)
    return (logits.mean(0), ent.mean(0), soft.mean(0), soft.std(0, ddof=1))


# ----------------------------------------------------------------------------
if __name__ == "__main__":
    # small, CIFAR-like shapes
    B, C, H, W = 4, 3, 16, 16       # image batch (NCHW)
    F = 64                          # backbone feature dim (stand-in backbone)
    NC = 10                         # number of classes
    R = 16                          # lora_r = 16 (as in the module)
    P = 4                           # num_particles
    SCALING = 1.0                   # lora scaling (alpha / r)

    key = jax.random.PRNGKey(0)
    k = jax.random.split(key, 7)
    params = {
        "conv_w": jax.random.normal(k[0], (F, C, 3, 3), jnp.float32) * 0.1,
        "conv_b": jax.random.normal(k[1], (F,), jnp.float32) * 0.1,
        "w0":     jax.random.normal(k[2], (NC, F), jnp.float32) * 0.1,
        "bias":   jax.random.normal(k[3], (NC,), jnp.float32) * 0.1,
        # TODO(synk): standard LoRA init has B=0 (identical particles); a small
        # random init keeps the cross-particle statistics non-trivial.
        "lora_a": jax.random.normal(k[4], (P, R, F), jnp.float32) * 0.05,
        "lora_b": jax.random.normal(k[5], (P, NC, R), jnp.float32) * 0.05,
        "scaling": SCALING,
    }
    image = jax.random.normal(k[6], (B, C, H, W), jnp.float32)

    # one-time weight preparation (padding / bf16 casts / block-diag packing)
    prepped, cfg = prepare_params(params, num_classes=NC)
    forward = make_forward(prepped, cfg)

    logits, entropies, soft_out, stds = jax.block_until_ready(
        forward(image, return_entropy=True))

    ref_logits, ref_ent, ref_soft, ref_std = reference_forward(image, params)
    np.testing.assert_allclose(np.asarray(logits), np.asarray(ref_logits), rtol=2e-2, atol=2e-2)
    np.testing.assert_allclose(np.asarray(soft_out), np.asarray(ref_soft), rtol=2e-2, atol=2e-2)
    np.testing.assert_allclose(np.asarray(stds), np.asarray(ref_std), rtol=2e-2, atol=2e-2)
    np.testing.assert_allclose(np.asarray(entropies), np.asarray(ref_ent), rtol=2e-2, atol=2e-2)

    print("KERNEL_OK")
</pallas_src>

<mosaic_0001>
module attributes {stable_mosaic.version = 11 : i64} {
  func.func @_fused_svgd_kernel(%arg0: i32, %arg1: memref<2048x32xbf16, #tpu.memory_space<vmem>>, %arg2: memref<32x128xbf16, #tpu.memory_space<vmem>>, %arg3: memref<1x128xf32, #tpu.memory_space<vmem>>, %arg4: memref<128x128xbf16, #tpu.memory_space<vmem>>, %arg5: memref<1x128xf32, #tpu.memory_space<vmem>>, %arg6: memref<128x64xbf16, #tpu.memory_space<vmem>>, %arg7: memref<64x512xbf16, #tpu.memory_space<vmem>>, %arg8: memref<8x512xf32, #tpu.memory_space<vmem>>) attributes {dimension_semantics = [#tpu.dimension_semantics<arbitrary>], iteration_bounds = array<i64: 1>, scalar_prefetch = 0 : i64, scratch_operands = 0 : i64, tpu.core_type = #tpu.core_type<tc>, window_params = [{pipeline_mode = #tpu.pipeline_mode<synchronous>, transform_indices = @transform_0, window_bounds = array<i64: 2048, 32>}, {pipeline_mode = #tpu.pipeline_mode<synchronous>, transform_indices = @transform_1, window_bounds = array<i64: 32, 128>}, {pipeline_mode = #tpu.pipeline_mode<synchronous>, transform_indices = @transform_2, window_bounds = array<i64: 1, 128>}, {pipeline_mode = #tpu.pipeline_mode<synchronous>, transform_indices = @transform_3, window_bounds = array<i64: 128, 128>}, {pipeline_mode = #tpu.pipeline_mode<synchronous>, transform_indices = @transform_4, window_bounds = array<i64: 1, 128>}, {pipeline_mode = #tpu.pipeline_mode<synchronous>, transform_indices = @transform_5, window_bounds = array<i64: 128, 64>}, {pipeline_mode = #tpu.pipeline_mode<synchronous>, transform_indices = @transform_6, window_bounds = array<i64: 64, 512>}, {pipeline_mode = #tpu.pipeline_mode<synchronous>, transform_indices = @transform_7, window_bounds = array<i64: 8, 512>}]} {
    %c0 = arith.constant 0 : index
    %c0_0 = arith.constant 0 : index
    %0 = vector.load %arg1[%c0, %c0_0] : memref<2048x32xbf16, #tpu.memory_space<vmem>>, vector<2048x32xbf16>
    %c0_1 = arith.constant 0 : index
    %c0_2 = arith.constant 0 : index
    %1 = vector.load %arg2[%c0_1, %c0_2] : memref<32x128xbf16, #tpu.memory_space<vmem>>, vector<32x128xbf16>
    %cst = arith.constant dense<0.000000e+00> : vector<2048x128xf32>
    %2 = tpu.matmul %0, %1, %cst {dimension_numbers = #tpu.dot_dimension_numbers<[1], [0], [0], [1], [0, 0, 1, 1], [], []>} : vector<2048x32xbf16>, vector<32x128xbf16>, vector<2048x128xf32> -> vector<2048x128xf32>
    %c0_3 = arith.constant 0 : index
    %c0_4 = arith.constant 0 : index
    %3 = vector.load %arg3[%c0_3, %c0_4] : memref<1x128xf32, #tpu.memory_space<vmem>>, vector<1x128xf32>
    %4 = vector.broadcast %3 : vector<1x128xf32> to vector<2048x128xf32>
    %5 = arith.addf %2, %4 : vector<2048x128xf32>
    %cst_5 = arith.constant 0.000000e+00 : f32
    %6 = vector.broadcast %cst_5 : f32 to vector<2048x128xf32>
    %7 = arith.maximumf %5, %6 : vector<2048x128xf32>
    %8 = vector.shape_cast %7 : vector<2048x128xf32> to vector<8x256x128xf32>
    %cst_6 = arith.constant dense<0.000000e+00> : vector<8x128xf32>
    %9 = vector.multi_reduction <add>, %8, %cst_6 [1] : vector<8x256x128xf32> to vector<8x128xf32>
    %cst_7 = arith.constant 3.906250e-03 : f32
    %10 = vector.broadcast %cst_7 : f32 to vector<8x128xf32>
    %11 = arith.mulf %9, %10 : vector<8x128xf32>
    %12 = arith.truncf %11 : vector<8x128xf32> to vector<8x128xbf16>
    %c0_8 = arith.constant 0 : index
    %c0_9 = arith.constant 0 : index
    %13 = vector.load %arg4[%c0_8, %c0_9] : memref<128x128xbf16, #tpu.memory_space<vmem>>, vector<128x128xbf16>
    %cst_10 = arith.constant dense<0.000000e+00> : vector<8x128xf32>
    %14 = tpu.matmul %12, %13, %cst_10 {dimension_numbers = #tpu.dot_dimension_numbers<[1], [0], [0], [1], [0, 0, 1, 1], [], []>} : vector<8x128xbf16>, vector<128x128xbf16>, vector<8x128xf32> -> vector<8x128xf32>
    %c0_11 = arith.constant 0 : index
    %c0_12 = arith.constant 0 : index
    %15 = vector.load %arg5[%c0_11, %c0_12] : memref<1x128xf32, #tpu.memory_space<vmem>>, vector<1x128xf32>
    %16 = vector.broadcast %15 : vector<1x128xf32> to vector<8x128xf32>
    %17 = arith.addf %14, %16 : vector<8x128xf32>
    %c0_13 = arith.constant 0 : index
    %c0_14 = arith.constant 0 : index
    %18 = vector.load %arg6[%c0_13, %c0_14] : memref<128x64xbf16, #tpu.memory_space<vmem>>, vector<128x64xbf16>
    %cst_15 = arith.constant dense<0.000000e+00> : vector<8x64xf32>
    %19 = tpu.matmul %12, %18, %cst_15 {dimension_numbers = #tpu.dot_dimension_numbers<[1], [0], [0], [1], [0, 0, 1, 1], [], []>} : vector<8x128xbf16>, vector<128x64xbf16>, vector<8x64xf32> -> vector<8x64xf32>
    %c0_16 = arith.constant 0 : index
    %c0_17 = arith.constant 0 : index
    %20 = vector.load %arg7[%c0_16, %c0_17] : memref<64x512xbf16, #tpu.memory_space<vmem>>, vector<64x512xbf16>
    %cst_18 = arith.constant dense<0.000000e+00> : vector<8x512xf32>
    %21 = tpu.matmul %19, %20, %cst_18 {dimension_numbers = #tpu.dot_dimension_numbers<[1], [0], [0], [1], [0, 0, 1, 1], [], []>} : vector<8x64xf32>, vector<64x512xbf16>, vector<8x512xf32> -> vector<8x512xf32>
    %22 = vector.extract_strided_slice %21 {offsets = [0, 0], sizes = [8, 128], strides = [1, 1]} : vector<8x512xf32> to vector<8x128xf32>
    %23 = arith.addf %17, %22 : vector<8x128xf32>
    %cst_19 = arith.constant dense<0xFF800000> : vector<8xf32>
    %24 = vector.multi_reduction <maximumf>, %23, %cst_19 [1] : vector<8x128xf32> to vector<8xf32>
    %25 = vector.shape_cast %24 : vector<8xf32> to vector<8x1xf32>
    %26 = vector.broadcast %25 : vector<8x1xf32> to vector<8x128xf32>
    %27 = arith.subf %23, %26 : vector<8x128xf32>
    %28 = math.exp %27 : vector<8x128xf32>
    %cst_20 = arith.constant dense<0.000000e+00> : vector<8xf32>
    %29 = vector.multi_reduction <add>, %28, %cst_20 [1] : vector<8x128xf32> to vector<8xf32>
    %30 = vector.shape_cast %29 : vector<8xf32> to vector<8x1xf32>
    %31 = tpu.reciprocal %30 {approx = true} : vector<8x1xf32> -> vector<8x1xf32>
    %32 = vector.broadcast %31 : vector<8x1xf32> to vector<8x128xf32>
    %33 = arith.mulf %28, %32 : vector<8x128xf32>
    %34 = vector.broadcast %25 : vector<8x1xf32> to vector<8x128xf32>
    %35 = arith.subf %23, %34 : vector<8x128xf32>
    %36 = math.log %30 : vector<8x1xf32>
    %37 = vector.broadcast %36 : vector<8x1xf32> to vector<8x128xf32>
    %38 = arith.subf %35, %37 : vector<8x128xf32>
    %39 = arith.mulf %33, %38 : vector<8x128xf32>
    %cst_21 = arith.constant dense<0.000000e+00> : vector<8xf32>
    %40 = vector.multi_reduction <add>, %39, %cst_21 [1] : vector<8x128xf32> to vector<8xf32>
    %41 = vector.shape_cast %40 : vector<8xf32> to vector<8x1xf32>
    %cst_22 = arith.constant 0.000000e+00 : f32
    %42 = vector.broadcast %cst_22 : f32 to vector<8x1xf32>
    %43 = arith.subf %42, %41 : vector<8x1xf32>
    %44 = vector.extract_strided_slice %21 {offsets = [0, 128], sizes = [8, 128], strides = [1, 1]} : vector<8x512xf32> to vector<8x128xf32>
    %45 = arith.addf %17, %44 : vector<8x128xf32>
    %cst_23 = arith.constant dense<0xFF800000> : vector<8xf32>
    %46 = vector.multi_reduction <maximumf>, %45, %cst_23 [1] : vector<8x128xf32> to vector<8xf32>
    %47 = vector.shape_cast %46 : vector<8xf32> to vector<8x1xf32>
    %48 = vector.broadcast %47 : vector<8x1xf32> to vector<8x128xf32>
    %49 = arith.subf %45, %48 : vector<8x128xf32>
    %50 = math.exp %49 : vector<8x128xf32>
    %cst_24 = arith.constant dense<0.000000e+00> : vector<8xf32>
    %51 = vector.multi_reduction <add>, %50, %cst_24 [1] : vector<8x128xf32> to vector<8xf32>
    %52 = vector.shape_cast %51 : vector<8xf32> to vector<8x1xf32>
    %53 = tpu.reciprocal %52 {approx = true} : vector<8x1xf32> -> vector<8x1xf32>
    %54 = vector.broadcast %53 : vector<8x1xf32> to vector<8x128xf32>
    %55 = arith.mulf %50, %54 : vector<8x128xf32>
    %56 = vector.broadcast %47 : vector<8x1xf32> to vector<8x128xf32>
    %57 = arith.subf %45, %56 : vector<8x128xf32>
    %58 = math.log %52 : vector<8x1xf32>
    %59 = vector.broadcast %58 : vector<8x1xf32> to vector<8x128xf32>
    %60 = arith.subf %57, %59 : vector<8x128xf32>
    %61 = arith.mulf %55, %60 : vector<8x128xf32>
    %cst_25 = arith.constant dense<0.000000e+00> : vector<8xf32>
    %62 = vector.multi_reduction <add>, %61, %cst_25 [1] : vector<8x128xf32> to vector<8xf32>
    %63 = vector.shape_cast %62 : vector<8xf32> to vector<8x1xf32>
    %cst_26 = arith.constant 0.000000e+00 : f32
    %64 = vector.broadcast %cst_26 : f32 to vector<8x1xf32>
    %65 = arith.subf %64, %63 : vector<8x1xf32>
    %66 = arith.addf %23, %45 : vector<8x128xf32>
    %67 = arith.addf %43, %65 : vector<8x1xf32>
    %68 = vector.extract_strided_slice %21 {offsets = [0, 256], sizes = [8, 128], strides = [1, 1]} : vector<8x512xf32> to vector<8x128xf32>
    %69 = arith.addf %17, %68 : vector<8x128xf32>
    %cst_27 = arith.constant dense<0xFF800000> : vector<8xf32>
    %70 = vector.multi_reduction <maximumf>, %69, %cst_27 [1] : vector<8x128xf32> to vector<8xf32>
    %71 = vector.shape_cast %70 : vector<8xf32> to vector<8x1xf32>
    %72 = vector.broadcast %71 : vector<8x1xf32> to vector<8x128xf32>
    %73 = arith.subf %69, %72 : vector<8x128xf32>
    %74 = math.exp %73 : vector<8x128xf32>
    %cst_28 = arith.constant dense<0.000000e+00> : vector<8xf32>
    %75 = vector.multi_reduction <add>, %74, %cst_28 [1] : vector<8x128xf32> to vector<8xf32>
    %76 = vector.shape_cast %75 : vector<8xf32> to vector<8x1xf32>
    %77 = tpu.reciprocal %76 {approx = true} : vector<8x1xf32> -> vector<8x1xf32>
    %78 = vector.broadcast %77 : vector<8x1xf32> to vector<8x128xf32>
    %79 = arith.mulf %74, %78 : vector<8x128xf32>
    %80 = vector.broadcast %71 : vector<8x1xf32> to vector<8x128xf32>
    %81 = arith.subf %69, %80 : vector<8x128xf32>
    %82 = math.log %76 : vector<8x1xf32>
    %83 = vector.broadcast %82 : vector<8x1xf32> to vector<8x128xf32>
    %84 = arith.subf %81, %83 : vector<8x128xf32>
    %85 = arith.mulf %79, %84 : vector<8x128xf32>
    %cst_29 = arith.constant dense<0.000000e+00> : vector<8xf32>
    %86 = vector.multi_reduction <add>, %85, %cst_29 [1] : vector<8x128xf32> to vector<8xf32>
    %87 = vector.shape_cast %86 : vector<8xf32> to vector<8x1xf32>
    %cst_30 = arith.constant 0.000000e+00 : f32
    %88 = vector.broadcast %cst_30 : f32 to vector<8x1xf32>
    %89 = arith.subf %88, %87 : vector<8x1xf32>
    %90 = arith.addf %66, %69 : vector<8x128xf32>
    %91 = arith.addf %67, %89 : vector<8x1xf32>
    %92 = vector.extract_strided_slice %21 {offsets = [0, 384], sizes = [8, 128], strides = [1, 1]} : vector<8x512xf32> to vector<8x128xf32>
    %93 = arith.addf %17, %92 : vector<8x128xf32>
    %cst_31 = arith.constant dense<0xFF800000> : vector<8xf32>
    %94 = vector.multi_reduction <maximumf>, %93, %cst_31 [1] : vector<8x128xf32> to vector<8xf32>
    %95 = vector.shape_cast %94 : vector<8xf32> to vector<8x1xf32>
    %96 = vector.broadcast %95 : vector<8x1xf32> to vector<8x128xf32>
    %97 = arith.subf %93, %96 : vector<8x128xf32>
    %98 = math.exp %97 : vector<8x128xf32>
    %cst_32 = arith.constant dense<0.000000e+00> : vector<8xf32>
    %99 = vector.multi_reduction <add>, %98, %cst_32 [1] : vector<8x128xf32> to vector<8xf32>
    %100 = vector.shape_cast %99 : vector<8xf32> to vector<8x1xf32>
    %101 = tpu.reciprocal %100 {approx = true} : vector<8x1xf32> -> vector<8x1xf32>
    %102 = vector.broadcast %101 : vector<8x1xf32> to vector<8x128xf32>
    %103 = arith.mulf %98, %102 : vector<8x128xf32>
    %104 = vector.broadcast %95 : vector<8x1xf32> to vector<8x128xf32>
    %105 = arith.subf %93, %104 : vector<8x128xf32>
    %106 = math.log %100 : vector<8x1xf32>
    %107 = vector.broadcast %106 : vector<8x1xf32> to vector<8x128xf32>
    %108 = arith.subf %105, %107 : vector<8x128xf32>
    %109 = arith.mulf %103, %108 : vector<8x128xf32>
    %cst_33 = arith.constant dense<0.000000e+00> : vector<8xf32>
    %110 = vector.multi_reduction <add>, %109, %cst_33 [1] : vector<8x128xf32> to vector<8xf32>
    %111 = vector.shape_cast %110 : vector<8xf32> to vector<8x1xf32>
    %cst_34 = arith.constant 0.000000e+00 : f32
    %112 = vector.broadcast %cst_34 : f32 to vector<8x1xf32>
    %113 = arith.subf %112, %111 : vector<8x1xf32>
    %114 = arith.addf %90, %93 : vector<8x128xf32>
    %115 = arith.addf %91, %113 : vector<8x1xf32>
    %116 = arith.addf %33, %55 : vector<8x128xf32>
    %117 = arith.addf %116, %79 : vector<8x128xf32>
    %118 = arith.addf %117, %103 : vector<8x128xf32>
    %cst_35 = arith.constant 2.500000e-01 : f32
    %119 = vector.broadcast %cst_35 : f32 to vector<8x128xf32>
    %120 = arith.mulf %118, %119 : vector<8x128xf32>
    %cst_36 = arith.constant 0.000000e+00 : f32
    %121 = vector.broadcast %cst_36 : f32 to vector<8x128xf32>
    %122 = arith.subf %33, %120 : vector<8x128xf32>
    %123 = arith.mulf %122, %122 : vector<8x128xf32>
    %124 = arith.addf %121, %123 : vector<8x128xf32>
    %125 = arith.subf %55, %120 : vector<8x128xf32>
    %126 = arith.mulf %125, %125 : vector<8x128xf32>
    %127 = arith.addf %124, %126 : vector<8x128xf32>
    %128 = arith.subf %79, %120 : vector<8x128xf32>
    %129 = arith.mulf %128, %128 : vector<8x128xf32>
    %130 = arith.addf %127, %129 : vector<8x128xf32>
    %131 = arith.subf %103, %120 : vector<8x128xf32>
    %132 = arith.mulf %131, %131 : vector<8x128xf32>
    %133 = arith.addf %130, %132 : vector<8x128xf32>
    %cst_37 = arith.constant 0.333333343 : f32
    %134 = vector.broadcast %cst_37 : f32 to vector<8x128xf32>
    %135 = arith.mulf %133, %134 : vector<8x128xf32>
    %136 = math.sqrt %135 : vector<8x128xf32>
    %cst_38 = arith.constant 2.500000e-01 : f32
    %137 = vector.broadcast %cst_38 : f32 to vector<8x1xf32>
    %138 = arith.mulf %115, %137 : vector<8x1xf32>
    %139 = vector.shape_cast %138 : vector<8x1xf32> to vector<8x1xf32>
    %140 = vector.broadcast %139 : vector<8x1xf32> to vector<8x128xf32>
    %cst_39 = arith.constant 2.500000e-01 : f32
    %141 = vector.broadcast %cst_39 : f32 to vector<8x128xf32>
    %142 = arith.mulf %114, %141 : vector<8x128xf32>
    %c0_40 = arith.constant 0 : index
    %c0_41 = arith.constant 0 : index
    %143 = vector.load %arg8[%c0_40, %c0_41] : memref<8x512xf32, #tpu.memory_space<vmem>>, vector<8x128xf32>
    tpu.vector_store %arg8[%c0_40, %c0_41], %142 {strides = array<i32>} : memref<8x512xf32, #tpu.memory_space<vmem>>, vector<8x128xf32>,
    %c0_42 = arith.constant 0 : index
    %c128 = arith.constant 128 : index
    %144 = vector.load %arg8[%c0_42, %c128] : memref<8x512xf32, #tpu.memory_space<vmem>>, vector<8x128xf32>
    tpu.vector_store %arg8[%c0_42, %c128], %120 {strides = array<i32>} : memref<8x512xf32, #tpu.memory_space<vmem>>, vector<8x128xf32>,
    %c0_43 = arith.constant 0 : index
    %c256 = arith.constant 256 : index
    %145 = vector.load %arg8[%c0_43, %c256] : memref<8x512xf32, #tpu.memory_space<vmem>>, vector<8x128xf32>
    tpu.vector_store %arg8[%c0_43, %c256], %136 {strides = array<i32>} : memref<8x512xf32, #tpu.memory_space<vmem>>, vector<8x128xf32>,
    %c0_44 = arith.constant 0 : index
    %c384 = arith.constant 384 : index
    %146 = vector.load %arg8[%c0_44, %c384] : memref<8x512xf32, #tpu.memory_space<vmem>>, vector<8x128xf32>
    tpu.vector_store %arg8[%c0_44, %c384], %140 {strides = array<i32>} : memref<8x512xf32, #tpu.memory_space<vmem>>, vector<8x128xf32>,
    return
  }
  func.func @transform_0(%arg0: i32) -> (i32, i32) {
    %c0_i32 = arith.constant 0 : i32
    %c0_i32_0 = arith.constant 0 : i32
    %c0_i32_1 = arith.constant 0 : i32
    return %c0_i32, %c0_i32_0 : i32, i32
  }
  func.func @transform_1(%arg0: i32) -> (i32, i32) {
    %c0_i32 = arith.constant 0 : i32
    %c0_i32_0 = arith.constant 0 : i32
    %c0_i32_1 = arith.constant 0 : i32
    return %c0_i32, %c0_i32_0 : i32, i32
  }
  func.func @transform_2(%arg0: i32) -> (i32, i32) {
    %c0_i32 = arith.constant 0 : i32
    %c0_i32_0 = arith.constant 0 : i32
    %c0_i32_1 = arith.constant 0 : i32
    return %c0_i32, %c0_i32_0 : i32, i32
  }
  func.func @transform_3(%arg0: i32) -> (i32, i32) {
    %c0_i32 = arith.constant 0 : i32
    %c0_i32_0 = arith.constant 0 : i32
    %c0_i32_1 = arith.constant 0 : i32
    return %c0_i32, %c0_i32_0 : i32, i32
  }
  func.func @transform_4(%arg0: i32) -> (i32, i32) {
    %c0_i32 = arith.constant 0 : i32
    %c0_i32_0 = arith.constant 0 : i32
    %c0_i32_1 = arith.constant 0 : i32
    return %c0_i32, %c0_i32_0 : i32, i32
  }
  func.func @transform_5(%arg0: i32) -> (i32, i32) {
    %c0_i32 = arith.constant 0 : i32
    %c0_i32_0 = arith.constant 0 : i32
    %c0_i32_1 = arith.constant 0 : i32
    return %c0_i32, %c0_i32_0 : i32, i32
  }
  func.func @transform_6(%arg0: i32) -> (i32, i32) {
    %c0_i32 = arith.constant 0 : i32
    %c0_i32_0 = arith.constant 0 : i32
    %c0_i32_1 = arith.constant 0 : i32
    return %c0_i32, %c0_i32_0 : i32, i32
  }
  func.func @transform_7(%arg0: i32) -> (i32, i32) {
    %c0_i32 = arith.constant 0 : i32
    %c0_i32_0 = arith.constant 0 : i32
    %c0_i32_1 = arith.constant 0 : i32
    return %c0_i32, %c0_i32_0 : i32, i32
  }
}

</mosaic_0001>

<bundles_post_ra>
// kernel: _forward.1
= control target key start
LH: loop header
LB: loop body
LE: loop exit
PB: predicated region body
PF: predicated region fallthrough
CT: control target
= control target key end

     0   :  { %vm946_vm0 = vcmask 261120   ;;  %vm2995_vm1 = vcmask 1041409   ;;  %vm4436_vm2 = vmmov 0   ;;  %vm2997_vm3 = vcmask 1042434   ;;  %s5463_s1 = inlined_call_operand.vmem [shape: bf16[32,128], index: 1, kind: input, shape index: {}]   ;;  %s5464_s0 = inlined_call_operand.vmem [shape: bf16[2048,32], index: 0, kind: input, shape index: {}]   ;;  %s5465_s2 = inlined_call_operand.vmem [shape: f32[1,128], index: 2, kind: input, shape index: {}]   ;;  %s5466_s3 = inlined_call_operand.vmem [shape: bf16[128,128], index: 3, kind: input, shape index: {}]   ;;  %s5467_s5 = inlined_call_operand.vmem [shape: bf16[128,64], index: 5, kind: input, shape index: {}]   ;;  %s5468_s6 = inlined_call_operand.vmem [shape: bf16[64,512], index: 6, kind: input, shape index: {}]   ;;  %s5469_s4 = inlined_call_operand.vmem [shape: f32[1,128], index: 4, kind: input, shape index: {}]   ;;  %s5470_s7 = inlined_call_operand.vmem [shape: f32[8,512], index: 7, kind: output, shape index: {}]  }
   0x1   :  { %v4237_v0 = vld [vmem:[%s5463_s1] sm:$0xff]   ;;  %v4238_v1 = vld [vmem:[%s5463_s1 + $0x8] sm:$0xff]   ;;  %v4241_v4 = vld [vmem:[%s5464_s0 + $0x10] sm:$0xff]   ;;  %vm2999_vm4 = vcmask 1043459   ;;  %vm3001_vm5 = vcmask 1044484   ;;  %vm3003_vm6 = vcmask 1045509  }
   0x2   :  { %3931 = vmatprep.subr.bf16.mxu0 %v4237_v0  ;;  %v4239_v2 = vld [vmem:[%s5464_s0] sm:$0xff]   ;;  %4231 = vmatprep.subr.bf16.mxu1 %v4237_v0  ;;  %v4240_v3 = vld [vmem:[%s5464_s0 + $0x8] sm:$0xff]   ;;  %v4242_v5 = vld [vmem:[%s5464_s0 + $0x18] sm:$0xff]   ;;  %vm3005_vm7 = vcmask 1046534   ;;  %vm3007_vm8 = vcmask 1047559   ;;  %vm3299_vm9 = vcmask 523264  }
   0x3   :  { %3932 = vmatpush3.bf16.msra.mxu0 %v4237_v0  ;;  %4233 = vmatpush3.bf16.msra.mxu1 %v4237_v0  ;;  %v4243_v6 = vld [vmem:[%s5464_s0 + $0x20] sm:$0xff]   ;;  %v4244_v7 = vld [vmem:[%s5464_s0 + $0x28] sm:$0xff]   ;;  %v4245_v8 = vld [vmem:[%s5464_s0 + $0x30] sm:$0xff]  }
   0x4   :  { %3933 = vmatprep.subr.bf16.mxu0 %v4238_v1  ;;  %3935 = vmatprep.mubr.msk.bf16.mxu0 %vm946_vm0, %v4239_v2  ;;  %v4263_v9 = vld [vmem:[%s5464_s0 + $0x250] sm:$0xff]   ;;  %v4264_v10 = vld [vmem:[%s5464_s0 + $0x258] sm:$0xff]   ;;  %v4267_v12 = vld [vmem:[%s5464_s0 + $0x260] sm:$0xff]  }
   0x5   :  { %4232 = vmatprep.subr.bf16.mxu1 %v4238_v1  ;;  %4083 = vmatprep.mubr.msk.bf16.mxu1 %vm946_vm0, %v4263_v9  ;;  %v4246_v11 = vld [vmem:[%s5464_s0 + $0x38] sm:$0xff]   ;;  %v4247_v13 = vld [vmem:[%s5464_s0 + $0x40] sm:$0xff]   ;;  %v4268_v14 = vld [vmem:[%s5464_s0 + $0x268] sm:$0xff]  }
   0x6   :  { %v4271_v15 = vld [vmem:[%s5464_s0 + $0x270] sm:$0xff]   ;;  %v4248_v16 = vld [vmem:[%s5464_s0 + $0x48] sm:$0xff]   ;;  %v4272_v18 = vld [vmem:[%s5464_s0 + $0x278] sm:$0xff]  }
   0x7   :  { %3934 = vmatpush3.bf16.msra.mxu0 %v4238_v1  ;;  %4234 = vmatpush3.bf16.msra.mxu1 %v4238_v1  ;;  %v4249_v17 = vld [vmem:[%s5464_s0 + $0x50] sm:$0xff]   ;;  %v4275_v19 = vld [vmem:[%s5464_s0 + $0x280] sm:$0xff]   ;;  %v4250_v20 = vld [vmem:[%s5464_s0 + $0x58] sm:$0xff]  }
   0x8   :  { %v4251_v21 = vld [vmem:[%s5464_s0 + $0x60] sm:$0xff]   ;;  %v4276_v22 = vld [vmem:[%s5464_s0 + $0x288] sm:$0xff]   ;;  %v4279_v23 = vld [vmem:[%s5464_s0 + $0x290] sm:$0xff]  }
   0x9   :  { %v4252_v24 = vld [vmem:[%s5464_s0 + $0x68] sm:$0xff]   ;;  %v4253_v25 = vld [vmem:[%s5464_s0 + $0x70] sm:$0xff]   ;;  %v4280_v26 = vld [vmem:[%s5464_s0 + $0x298] sm:$0xff]  }
   0xa   :  { %3936 = vmatmul.mubr.msk.bf16.vlgmr.msra.gmra.mrb[0].mxu0 %vm946_vm0, %v4240_v3  ;;  %4084 = vmatmul.mubr.msk.bf16.vlgmr.msra.gmra.mrb[0].mxu1 %vm946_vm0, %v4264_v10  ;;  %v4283_v27 = vld [vmem:[%s5464_s0 + $0x2a0] sm:$0xff]   ;;  %v4254_v28 = vld [vmem:[%s5464_s0 + $0x78] sm:$0xff]   ;;  %v4284_v30 = vld [vmem:[%s5464_s0 + $0x2a8] sm:$0xff]  }
   0xb   :  { %3939 = vmatprep.mubr.msk.bf16.mxu0 %vm946_vm0, %v4241_v4  ;;  %4087 = vmatprep.mubr.msk.bf16.mxu1 %vm946_vm0, %v4267_v12  ;;  %v4255_v29 = vld [vmem:[%s5464_s0 + $0x80] sm:$0xff]   ;;  %v4287_v31 = vld [vmem:[%s5464_s0 + $0x2b0] sm:$0xff]   ;;  %v4256_v32 = vld [vmem:[%s5464_s0 + $0x88] sm:$0xff]  }
   0xc   :  { %v4257_v33 = vld [vmem:[%s5464_s0 + $0x90] sm:$0xff]   ;;  %v4288_v34 = vld [vmem:[%s5464_s0 + $0x2b8] sm:$0xff]   ;;  %v4291_v35 = vld [vmem:[%s5464_s0 + $0x2c0] sm:$0xff]  }
   0xd   :  { %v4258_v36 = vld [vmem:[%s5464_s0 + $0x98] sm:$0xff]   ;;  %v4259_v37 = vld [vmem:[%s5464_s0 + $0xa0] sm:$0xff]   ;;  %v4292_v38 = vld [vmem:[%s5464_s0 + $0x2c8] sm:$0xff]  }
   0xe   :  { %v4295_v39 = vld [vmem:[%s5464_s0 + $0x2d0] sm:$0xff]   ;;  %v4260_v40 = vld [vmem:[%s5464_s0 + $0xa8] sm:$0xff]   ;;  %v4296_v42 = vld [vmem:[%s5464_s0 + $0x2d8] sm:$0xff]  }
   0xf   :  { %v4261_v41 = vld [vmem:[%s5464_s0 + $0xb0] sm:$0xff]   ;;  %v4299_v43 = vld [vmem:[%s5464_s0 + $0x2e0] sm:$0xff]   ;;  %v4262_v44 = vld [vmem:[%s5464_s0 + $0xb8] sm:$0xff]  }
  0x10   :  { %v4265_v45 = vld [vmem:[%s5464_s0 + $0xc0] sm:$0xff]   ;;  %v4300_v46 = vld [vmem:[%s5464_s0 + $0x2e8] sm:$0xff]   ;;  %v4303_v47 = vld [vmem:[%s5464_s0 + $0x2f0] sm:$0xff]  }
  0x11   :  { %v4266_v48 = vld [vmem:[%s5464_s0 + $0xc8] sm:$0xff]   ;;  %v4269_v49 = vld [vmem:[%s5464_s0 + $0xd0] sm:$0xff]   ;;  %v4304_v50 = vld [vmem:[%s5464_s0 + $0x2f8] sm:$0xff]  }
  0x12   :  { %3940 = vmatmul.mubr.msk.bf16.gmra.mrb[4].mxu0 %vm946_vm0, %v4242_v5  ;;  %4088 = vmatmul.mubr.msk.bf16.gmra.mrb[4].mxu1 %vm946_vm0, %v4268_v14  ;;  %v4307_v51 = vld [vmem:[%s5464_s0 + $0x300] sm:$0xff]   ;;  %v4270_v52 = vld [vmem:[%s5464_s0 + $0xd8] sm:$0xff]   ;;  %v4308_v54 = vld [vmem:[%s5464_s0 + $0x308] sm:$0xff]  }
  0x13   :  { %3943 = vmatprep.mubr.msk.bf16.mxu0 %vm946_vm0, %v4243_v6  ;;  %4091 = vmatprep.mubr.msk.bf16.mxu1 %vm946_vm0, %v4271_v15  ;;  %v4273_v53 = vld [vmem:[%s5464_s0 + $0xe0] sm:$0xff]   ;;  %v4311_v55 = vld [vmem:[%s5464_s0 + $0x310] sm:$0xff]   ;;  %v4274_v56 = vld [vmem:[%s5464_s0 + $0xe8] sm:$0xff]  }
  0x14   :  { %v4277_v57 = vld [vmem:[%s5464_s0 + $0xf0] sm:$0xff]   ;;  %v4312_v58 = vld [vmem:[%s5464_s0 + $0x318] sm:$0xff]   ;;  %v4315_v59 = vld [vmem:[%s5464_s0 + $0x320] sm:$0xff]  }
  0x15   :  { %v4278_v60 = vld [vmem:[%s5464_s0 + $0xf8] sm:$0xff]   ;;  %v4281_v61 = vld [vmem:[%s5464_s0 + $0x100] sm:$0xff]   ;;  %v4316_v62 = vld [vmem:[%s5464_s0 + $0x328] sm:$0xff]  }
  0x16   :  { %v4319_v63 = vld [vmem:[%s5464_s0 + $0x330] sm:$0xff]   ;;  %v4282_v0 = vld [vmem:[%s5464_s0 + $0x108] sm:$0xff]   ;;  %v4320_v2 = vld [vmem:[%s5464_s0 + $0x338] sm:$0xff]  }
  0x17   :  { %v4285_v1 = vld [vmem:[%s5464_s0 + $0x110] sm:$0xff]   ;;  %v4323_v3 = vld [vmem:[%s5464_s0 + $0x340] sm:$0xff]   ;;  %v4286_v4 = vld [vmem:[%s5464_s0 + $0x118] sm:$0xff]  }
  0x18   :  { %v4289_v5 = vld [vmem:[%s5464_s0 + $0x120] sm:$0xff]   ;;  %v4324_v6 = vld [vmem:[%s5464_s0 + $0x348] sm:$0xff]   ;;  %v4293_v9 = vld [vmem:[%s5464_s0 + $0x130] sm:$0xff]  }
  0x19   :  { %v4328_v10 = vld [vmem:[%s5464_s0 + $0x358] sm:$0xff]   ;;  %v4332_v14 = vld [vmem:[%s5464_s0 + $0x368] sm:$0xff]   ;;  %v4335_v15 = vld [vmem:[%s5464_s0 + $0x370] sm:$0xff]  }
  0x1a   :  { %3944 = vmatmul.mubr.msk.bf16.gmra.mrb[8].mxu0 %vm946_vm0, %v4244_v7  ;;  %4092 = vmatmul.mubr.msk.bf16.gmra.mrb[8].mxu1 %vm946_vm0, %v4272_v18  ;;  %v4327_v7 = vld [vmem:[%s5464_s0 + $0x350] sm:$0xff]   ;;  %v4294_v12 = vld [vmem:[%s5464_s0 + $0x138] sm:$0xff]  }
  0x1b   :  { %3947 = vmatprep.mubr.msk.bf16.mxu0 %vm946_vm0, %v4245_v8  ;;  %4095 = vmatprep.mubr.msk.bf16.mxu1 %vm946_vm0, %v4275_v19  ;;  %v4290_v8 = vld [vmem:[%s5464_s0 + $0x128] sm:$0xff]   ;;  %v4336_v18 = vld [vmem:[%s5464_s0 + $0x378] sm:$0xff]   ;;  %v4339_v19 = vld [vmem:[%s5464_s0 + $0x380] sm:$0xff]  }
  0x22   :  { %3948 = vmatmul.mubr.msk.bf16.gmra.mrb[12].mxu0 %vm946_vm0, %v4246_v11  ;;  %4096 = vmatmul.mubr.msk.bf16.gmra.mrb[12].mxu1 %vm946_vm0, %v4276_v22  ;;  %v4331_v11 = vld [vmem:[%s5464_s0 + $0x360] sm:$0xff]   ;;  %v4340_v22 = vld [vmem:[%s5464_s0 + $0x388] sm:$0xff]  }
  0x23   :  { %3951 = vmatprep.mubr.msk.bf16.mxu0 %vm946_vm0, %v4247_v13  ;;  %4099 = vmatprep.mubr.msk.bf16.mxu1 %vm946_vm0, %v4279_v23  ;;  %v4297_v13 = vld [vmem:[%s5464_s0 + $0x140] sm:$0xff]   ;;  %v4343_v23 = vld [vmem:[%s5464_s0 + $0x390] sm:$0xff]  }
  0x2a   :  { %3952 = vmatmul.mubr.msk.bf16.gmra.mrb[16].mxu0 %vm946_vm0, %v4248_v16  ;;  %4100 = vmatmul.mubr.msk.bf16.gmra.mrb[16].mxu1 %vm946_vm0, %v4280_v26  ;;  %v4298_v16 = vld [vmem:[%s5464_s0 + $0x148] sm:$0xff]   ;;  %v4344_v26 = vld [vmem:[%s5464_s0 + $0x398] sm:$0xff]  }
  0x2b   :  { %3955 = vmatprep.mubr.msk.bf16.mxu0 %vm946_vm0, %v4249_v17  ;;  %4103 = vmatprep.mubr.msk.bf16.mxu1 %vm946_vm0, %v4283_v27  ;;  %v4301_v17 = vld [vmem:[%s5464_s0 + $0x150] sm:$0xff]   ;;  %v4347_v27 = vld [vmem:[%s5464_s0 + $0x3a0] sm:$0xff]  }
  0x32   :  { %3956 = vmatmul.mubr.msk.bf16.gmra.mrb[20].mxu0 %vm946_vm0, %v4250_v20  ;;  %4104 = vmatmul.mubr.msk.bf16.gmra.mrb[20].mxu1 %vm946_vm0, %v4284_v30  ;;  %v4302_v20 = vld [vmem:[%s5464_s0 + $0x158] sm:$0xff]   ;;  %v4348_v30 = vld [vmem:[%s5464_s0 + $0x3a8] sm:$0xff]  }
  0x33   :  { %3959 = vmatprep.mubr.msk.bf16.mxu0 %vm946_vm0, %v4251_v21  ;;  %4107 = vmatprep.mubr.msk.bf16.mxu1 %vm946_vm0, %v4287_v31  ;;  %v4305_v21 = vld [vmem:[%s5464_s0 + $0x160] sm:$0xff]   ;;  %v4351_v31 = vld [vmem:[%s5464_s0 + $0x3b0] sm:$0xff]  }
  0x3a   :  { %3960 = vmatmul.mubr.msk.bf16.gmra.mrb[24].mxu0 %vm946_vm0, %v4252_v24  ;;  %4108 = vmatmul.mubr.msk.bf16.gmra.mrb[24].mxu1 %vm946_vm0, %v4288_v34  ;;  %v4306_v24 = vld [vmem:[%s5464_s0 + $0x168] sm:$0xff]   ;;  %v4352_v34 = vld [vmem:[%s5464_s0 + $0x3b8] sm:$0xff]  }
  0x3b   :  { %3963 = vmatprep.mubr.msk.bf16.mxu0 %vm946_vm0, %v4253_v25  ;;  %4111 = vmatprep.mubr.msk.bf16.mxu1 %vm946_vm0, %v4291_v35  ;;  %v4309_v25 = vld [vmem:[%s5464_s0 + $0x170] sm:$0xff]   ;;  %v4355_v35 = vld [vmem:[%s5464_s0 + $0x3c0] sm:$0xff]  }
  0x42   :  { %3964 = vmatmul.mubr.msk.bf16.gmra.mrb[28].mxu0 %vm946_vm0, %v4254_v28  ;;  %4112 = vmatmul.mubr.msk.bf16.gmra.mrb[28].mxu1 %vm946_vm0, %v4292_v38  ;;  %v4310_v28 = vld [vmem:[%s5464_s0 + $0x178] sm:$0xff]   ;;  %v4356_v38 = vld [vmem:[%s5464_s0 + $0x3c8] sm:$0xff]  }
  0x43   :  { %3967 = vmatprep.mubr.msk.bf16.mxu0 %vm946_vm0, %v4255_v29  ;;  %4115 = vmatprep.mubr.msk.bf16.mxu1 %vm946_vm0, %v4295_v39  ;;  %v4313_v29 = vld [vmem:[%s5464_s0 + $0x180] sm:$0xff]   ;;  %v4359_v39 = vld [vmem:[%s5464_s0 + $0x3d0] sm:$0xff]  }
  0x4a   :  { %3968 = vmatmul.mubr.msk.bf16.gmra.mrb[32].mxu0 %vm946_vm0, %v4256_v32  ;;  %4116 = vmatmul.mubr.msk.bf16.gmra.mrb[32].mxu1 %vm946_vm0, %v4296_v42  ;;  %v4314_v32 = vld [vmem:[%s5464_s0 + $0x188] sm:$0xff]   ;;  %v4360_v42 = vld [vmem:[%s5464_s0 + $0x3d8] sm:$0xff]  }
  0x4b   :  { %3971 = vmatprep.mubr.msk.bf16.mxu0 %vm946_vm0, %v4257_v33  ;;  %4119 = vmatprep.mubr.msk.bf16.mxu1 %vm946_vm0, %v4299_v43  ;;  %v4317_v33 = vld [vmem:[%s5464_s0 + $0x190] sm:$0xff]   ;;  %v4363_v43 = vld [vmem:[%s5464_s0 + $0x3e0] sm:$0xff]  }
  0x52   :  { %3972 = vmatmul.mubr.msk.bf16.gmra.mrb[36].mxu0 %vm946_vm0, %v4258_v36  ;;  %4120 = vmatmul.mubr.msk.bf16.gmra.mrb[36].mxu1 %vm946_vm0, %v4300_v46  ;;  %v4318_v36 = vld [vmem:[%s5464_s0 + $0x198] sm:$0xff]  }
  0x53   :  { %3975 = vmatprep.mubr.msk.bf16.mxu0 %vm946_vm0, %v4259_v37  ;;  %4123 = vmatprep.mubr.msk.bf16.mxu1 %vm946_vm0, %v4303_v47  ;;  %v4321_v37 = vld [vmem:[%s5464_s0 + $0x1a0] sm:$0xff]   ;;  %v4326_v47 = vld [vmem:[%s5464_s0 + $0x1b8] sm:$0xff]  }
  0x5a   :  { %3976 = vmatmul.mubr.msk.bf16.gmra.mrb[40].mxu0 %vm946_vm0, %v4260_v40  ;;  %4124 = vmatmul.mubr.msk.bf16.gmra.mrb[40].mxu1 %vm946_vm0, %v4304_v50  ;;  %v4322_v40 = vld [vmem:[%s5464_s0 + $0x1a8] sm:$0xff]   ;;  %v4329_v50 = vld [vmem:[%s5464_s0 + $0x1c0] sm:$0xff]  }
  0x5b   :  { %3979 = vmatprep.mubr.msk.bf16.mxu0 %vm946_vm0, %v4261_v41  ;;  %4127 = vmatprep.mubr.msk.bf16.mxu1 %vm946_vm0, %v4307_v51  ;;  %v4325_v41 = vld [vmem:[%s5464_s0 + $0x1b0] sm:$0xff]  }
  0x62   :  { %3980 = vmatmul.mubr.msk.bf16.gmra.mrb[44].mxu0 %vm946_vm0, %v4262_v44  ;;  %4128 = vmatmul.mubr.msk.bf16.gmra.mrb[44].mxu1 %vm946_vm0, %v4308_v54  ;;  %v4908_v44 = vld [vmem:[%s5465_s2] ss:$0 sm:$0xff]  ;;  %v4364_v54 = vld [vmem:[%s5464_s0 + $0x3e8] sm:$0xff]  }
  0x63   :  { %3983 = vmatprep.mubr.msk.bf16.mxu0 %vm946_vm0, %v4265_v45  ;;  %4131 = vmatprep.mubr.msk.bf16.mxu1 %vm946_vm0, %v4311_v55  ;;  %v4365_v55 = vld [vmem:[%s5464_s0 + $0x3f0] sm:$0xff]  }
  0x6a   :  { %3984 = vmatmul.mubr.msk.bf16.gmra.mrb[48].mxu0 %vm946_vm0, %v4266_v48  ;;  %4132 = vmatmul.mubr.msk.bf16.gmra.mrb[48].mxu1 %vm946_vm0, %v4312_v58 }
  0x6b   :  { %3987 = vmatprep.mubr.msk.bf16.mxu0 %vm946_vm0, %v4269_v49  ;;  %4135 = vmatprep.mubr.msk.bf16.mxu1 %vm946_vm0, %v4315_v59 }
  0x72   :  { %3988 = vmatmul.mubr.msk.bf16.gmra.mrb[52].mxu0 %vm946_vm0, %v4270_v52  ;;  %4136 = vmatmul.mubr.msk.bf16.gmra.mrb[52].mxu1 %vm946_vm0, %v4316_v62 }
  0x73   :  { %3991 = vmatprep.mubr.msk.bf16.mxu0 %vm946_vm0, %v4273_v53  ;;  %4139 = vmatprep.mubr.msk.bf16.mxu1 %vm946_vm0, %v4319_v63  ;;  %v4330_v63 = vld [vmem:[%s5464_s0 + $0x1c8] sm:$0xff]  }
  0x7a   :  { %3992 = vmatmul.mubr.msk.bf16.gmra.mrb[56].mxu0 %vm946_vm0, %v4274_v56  ;;  %4140 = vmatmul.mubr.msk.bf16.gmra.mrb[56].mxu1 %vm946_vm0, %v4320_v2 }
  0x7b   :  { %3995 = vmatprep.mubr.msk.bf16.mxu0 %vm946_vm0, %v4277_v57  ;;  %4143 = vmatprep.mubr.msk.bf16.mxu1 %vm946_vm0, %v4323_v3 }
  0x82   :  { %3996 = vmatmul.mubr.msk.bf16.gmra.mrb[60].mxu0 %vm946_vm0, %v4278_v60  ;;  %4144 = vmatmul.mubr.msk.bf16.gmra.mrb[60].mxu1 %vm946_vm0, %v4324_v6 }
  0x83   :  { %3999 = vmatprep.mubr.msk.bf16.mxu0 %vm946_vm0, %v4281_v61  ;;  %4147 = vmatprep.mubr.msk.bf16.mxu1 %vm946_vm0, %v4327_v7 }
  0x8a   :  { %4000 = vmatmul.mubr.msk.bf16.gmra.mrb[64].mxu0 %vm946_vm0, %v4282_v0  ;;  %4148 = vmatmul.mubr.msk.bf16.gmra.mrb[64].mxu1 %vm946_vm0, %v4328_v10  ;;  %v4366_v10 = vld [vmem:[%s5464_s0 + $0x3f8] sm:$0xff]  }
  0x8b   :  { %4003 = vmatprep.mubr.msk.bf16.mxu0 %vm946_vm0, %v4285_v1  ;;  %4151 = vmatprep.mubr.msk.bf16.mxu1 %vm946_vm0, %v4331_v11 }
  0x92   :  { %4004 = vmatmul.mubr.msk.bf16.gmra.mrb[68].mxu0 %vm946_vm0, %v4286_v4  ;;  %4152 = vmatmul.mubr.msk.bf16.gmra.mrb[68].mxu1 %vm946_vm0, %v4332_v14  ;;  %v4333_v4 = vld [vmem:[%s5464_s0 + $0x1d0] sm:$0xff]  }
  0x93   :  { %4007 = vmatprep.mubr.msk.bf16.mxu0 %vm946_vm0, %v4289_v5  ;;  %4155 = vmatprep.mubr.msk.bf16.mxu1 %vm946_vm0, %v4335_v15 }
  0x9a   :  { %4008 = vmatmul.mubr.msk.bf16.gmra.mrb[72].mxu0 %vm946_vm0, %v4290_v8  ;;  %4156 = vmatmul.mubr.msk.bf16.gmra.mrb[72].mxu1 %vm946_vm0, %v4336_v18  ;;  %v4334_v18 = vld [vmem:[%s5464_s0 + $0x1d8] sm:$0xff]  }
  0x9b   :  { %4011 = vmatprep.mubr.msk.bf16.mxu0 %vm946_vm0, %v4293_v9  ;;  %4159 = vmatprep.mubr.msk.bf16.mxu1 %vm946_vm0, %v4339_v19 }
  0xa2   :  { %4012 = vmatmul.mubr.msk.bf16.gmra.mrb[76].mxu0 %vm946_vm0, %v4294_v12  ;;  %4160 = vmatmul.mubr.msk.bf16.gmra.mrb[76].mxu1 %vm946_vm0, %v4340_v22 }
  0xa3   :  { %4015 = vmatprep.mubr.msk.bf16.mxu0 %vm946_vm0, %v4297_v13  ;;  %4163 = vmatprep.mubr.msk.bf16.mxu1 %vm946_vm0, %v4343_v23  ;;  %v4337_v23 = vld [vmem:[%s5464_s0 + $0x1e0] sm:$0xff]  }
  0xaa   :  { %4016 = vmatmul.mubr.msk.bf16.gmra.mrb[80].mxu0 %vm946_vm0, %v4298_v16  ;;  %4164 = vmatmul.mubr.msk.bf16.gmra.mrb[80].mxu1 %vm946_vm0, %v4344_v26 }
  0xab   :  { %4019 = vmatprep.mubr.msk.bf16.mxu0 %vm946_vm0, %v4301_v17  ;;  %4167 = vmatprep.mubr.msk.bf16.mxu1 %vm946_vm0, %v4347_v27 }
  0xb2   :  { %4020 = vmatmul.mubr.msk.bf16.gmra.mrb[84].mxu0 %vm946_vm0, %v4302_v20  ;;  %4168 = vmatmul.mubr.msk.bf16.gmra.mrb[84].mxu1 %vm946_vm0, %v4348_v30 }
  0xb3   :  { %4023 = vmatprep.mubr.msk.bf16.mxu0 %vm946_vm0, %v4305_v21  ;;  %4171 = vmatprep.mubr.msk.bf16.mxu1 %vm946_vm0, %v4351_v31 }
  0xba   :  { %4024 = vmatmul.mubr.msk.bf16.gmra.mrb[88].mxu0 %vm946_vm0, %v4306_v24  ;;  %4172 = vmatmul.mubr.msk.bf16.gmra.mrb[88].mxu1 %vm946_vm0, %v4352_v34 }
  0xbb   :  { %4027 = vmatprep.mubr.msk.bf16.mxu0 %vm946_vm0, %v4309_v25  ;;  %4175 = vmatprep.mubr.msk.bf16.mxu1 %vm946_vm0, %v4355_v35 }
  0xc2   :  { %4028 = vmatmul.mubr.msk.bf16.gmra.mrb[92].mxu0 %vm946_vm0, %v4310_v28  ;;  %4176 = vmatmul.mubr.msk.bf16.gmra.mrb[92].mxu1 %vm946_vm0, %v4356_v38 }
  0xc3   :  { %4031 = vmatprep.mubr.msk.bf16.mxu0 %vm946_vm0, %v4313_v29  ;;  %4179 = vmatprep.mubr.msk.bf16.mxu1 %vm946_vm0, %v4359_v39  ;;  %v4338_v39 = vld [vmem:[%s5464_s0 + $0x1e8] sm:$0xff]  }
  0xca   :  { %4032 = vmatmul.mubr.msk.bf16.gmra.mrb[96].mxu0 %vm946_vm0, %v4314_v32  ;;  %4180 = vmatmul.mubr.msk.bf16.gmra.mrb[96].mxu1 %vm946_vm0, %v4360_v42 }
  0xcb   :  { %4035 = vmatprep.mubr.msk.bf16.mxu0 %vm946_vm0, %v4317_v33  ;;  %4183 = vmatprep.mubr.msk.bf16.mxu1 %vm946_vm0, %v4363_v43  ;;  %v4435_v43 = vmov 0.0  }
  0xcc   :  { %4191 = vmatprep.subr.bf16.mxu1 %v4435_v43 }
  0xd2   :  { %4036 = vmatmul.mubr.msk.bf16.gmra.mrb[100].mxu0 %vm946_vm0, %v4318_v36  ;;  %4184 = vmatmul.mubr.msk.bf16.gmra.mrb[100].mxu1 %vm946_vm0, %v4364_v54 }
  0xd3   :  { %4039 = vmatprep.mubr.msk.bf16.mxu0 %vm946_vm0, %v4321_v37  ;;  %4187 = vmatprep.mubr.msk.bf16.mxu1 %vm946_vm0, %v4365_v55 }
  0xda   :  { %4040 = vmatmul.mubr.msk.bf16.gmra.mrb[104].mxu0 %vm946_vm0, %v4322_v40  ;;  %4188 = vmatmul.mubr.msk.bf16.gmra.mrb[104].mxu1 %vm946_vm0, %v4366_v10  ;;  %v4341_v40 = vld [vmem:[%s5464_s0 + $0x1f0] sm:$0xff]  }
  0xdb   :  { %4043 = vmatprep.mubr.msk.bf16.mxu0 %vm946_vm0, %v4325_v41  ;;  %4207 = vmatprep.mubr.msk.bf16.mxu1 %vm4436_vm2, %v4435_v43 }
  0xdd   :  { %v3937_v45 = vpop.f32.mrb[0].mxu0  ;;  %v4955_v25 = vpop.f32.mrb[0].mxu1 }
  0xde   :  { %v1365_v46 = vpop.f32.mrb[1].mxu0  ;;  %v1374_v52 = vadd.f32 %v3937_v45, %v4908_v44  ;;  %v4959_v30 = vpop.f32.mrb[1].mxu1 }
  0xdf   :  { %v1366_v48 = vadd.f32 %v4908_v44, %v1365_v46  ;;  %v3938_v49 = vpop.f32.mrb[2].mxu0  ;;  %v4963_v32 = vpop.f32.mrb[2].mxu1 }
  0xe0   :  { %v1368_v51 = vpop.f32.mrb[3].mxu0  ;;  %v1377_v57 = vadd.f32 %v3938_v49, %v4908_v44  ;;  %v2390_v59 = vmax.f32 %v1374_v52, 0.0  ;;  %v4966_v35 = vpop.f32.mrb[3].mxu1 }
  0xe1   :  { %v1369_v53 = vadd.f32 %v4908_v44, %v1368_v51  ;;  %v2388_v56 = vmax.f32 %v1366_v48, 0.0  ;;  %v4367_v48 = vld [vmem:[%s5466_s3] sm:$0xff]  }
  0xe2   :  { %4044 = vmatmul.mubr.msk.bf16.gmra.mrb[108].mxu0 %vm946_vm0, %v4326_v47  ;;  %v2391_v0 = vmax.f32 %v1377_v57, 0.0  ;;  %4192 = vmatpush3.bf16.msra.mxu1 %v4367_v48 }
  0xe3   :  { %v2389_v58 = vmax.f32 %v1369_v53, 0.0  ;;  %4047 = vmatprep.mubr.msk.bf16.mxu0 %vm946_vm0, %v4329_v50  ;;  %4193 = vmatprep.subr.bf16.mxu1 %v4435_v43 }
  0xe5   :  { %v2644_v60 = vadd.f32 %v2389_v58, %v2388_v56  ;;  %v3941_v61 = vpop.f32.mrb[4].mxu0  ;;  %v4979_v50 = vpop.f32.mrb[4].mxu1 }
  0xe6   :  { %v1381_v62 = vpop.f32.mrb[5].mxu0  ;;  %v1390_v6 = vadd.f32 %v3941_v61, %v4908_v44  ;;  %v4983_v55 = vpop.f32.mrb[5].mxu1 }
  0xe7   :  { %v2645_v1 = vadd.f32 %v2644_v60, %v2390_v59  ;;  %v1382_v2 = vadd.f32 %v4908_v44, %v1381_v62  ;;  %v3942_v3 = vpop.f32.mrb[6].mxu0  ;;  %v4986_v56 = vpop.f32.mrb[6].mxu1 }
  0xe8   :  { %v1384_v5 = vpop.f32.mrb[7].mxu0  ;;  %v1393_v12 = vadd.f32 %v3942_v3, %v4908_v44  ;;  %v2394_v14 = vmax.f32 %v1390_v6, 0.0  ;;  %v4991_v60 = vpop.f32.mrb[7].mxu1  ;;  %v4345_v6 = vld [vmem:[%s5464_s0 + $0x200] sm:$0xff]  }
  0xe9   :  { %v2392_v7 = vmax.f32 %v1382_v2, 0.0  ;;  %v2646_v8 = vadd.f32 %v2645_v1, %v2391_v0  ;;  %v1385_v9 = vadd.f32 %v4908_v44, %v1384_v5  ;;  %v4342_v1 = vld [vmem:[%s5464_s0 + $0x1f8] sm:$0xff]  }
  0xea   :  { %4048 = vmatmul.mubr.msk.bf16.gmra.mrb[112].mxu0 %vm946_vm0, %v4330_v63  ;;  %v2395_v19 = vmax.f32 %v1393_v12, 0.0 }
  0xeb   :  { %v2647_v11 = vadd.f32 %v2646_v8, %v2392_v7  ;;  %v2393_v13 = vmax.f32 %v1385_v9, 0.0  ;;  %4051 = vmatprep.mubr.msk.bf16.mxu0 %vm946_vm0, %v4333_v4 }
  0xed   :  { %v2648_v15 = vadd.f32 %v2647_v11, %v2393_v13  ;;  %v3945_v16 = vpop.f32.mrb[8].mxu0  ;;  %v5000_v8 = vpop.f32.mrb[8].mxu1 }
  0xee   :  { %v1397_v17 = vpop.f32.mrb[9].mxu0  ;;  %v1406_v26 = vadd.f32 %v3945_v16, %v4908_v44  ;;  %v5004_v13 = vpop.f32.mrb[9].mxu1 }
  0xef   :  { %v2649_v20 = vadd.f32 %v2648_v15, %v2394_v14  ;;  %v1398_v21 = vadd.f32 %v4908_v44, %v1397_v17  ;;  %v3946_v22 = vpop.f32.mrb[10].mxu0  ;;  %v5007_v14 = vpop.f32.mrb[10].mxu1 }
  0xf0   :  { %v1400_v24 = vpop.f32.mrb[11].mxu0  ;;  %v1409_v31 = vadd.f32 %v3946_v22, %v4908_v44  ;;  %v2398_v36 = vmax.f32 %v1406_v26, 0.0 }
  0xf1   :  { %v2396_v27 = vmax.f32 %v1398_v21, 0.0  ;;  %v2650_v28 = vadd.f32 %v2649_v20, %v2395_v19  ;;  %v1401_v29 = vadd.f32 %v4908_v44, %v1400_v24  ;;  %v4368_v19 = vld [vmem:[%s5466_s3 + $0x8] sm:$0xff]  }
  0xf2   :  { %4052 = vmatmul.mubr.msk.bf16.gmra.mrb[116].mxu0 %vm946_vm0, %v4334_v18  ;;  %v2399_v41 = vmax.f32 %v1409_v31, 0.0  ;;  %v5011_v18 = vpop.f32.mrb[11].mxu1  ;;  %4194 = vmatpush3.bf16.msra.mxu1 %v4368_v19  ;;  %v4346_v24 = vld [vmem:[%s5464_s0 + $0x208] sm:$0xff]   ;;  %v4349_v31 = vld [vmem:[%s5464_s0 + $0x210] sm:$0xff]  }
  0xf3   :  { %v2651_v33 = vadd.f32 %v2650_v28, %v2396_v27  ;;  %v2397_v34 = vmax.f32 %v1401_v29, 0.0  ;;  %4055 = vmatprep.mubr.msk.bf16.mxu0 %vm946_vm0, %v4337_v23  ;;  %4195 = vmatprep.subr.bf16.mxu1 %v4435_v43 }
  0xf5   :  { %v2652_v37 = vadd.f32 %v2651_v33, %v2397_v34  ;;  %v3949_v38 = vpop.f32.mrb[12].mxu0  ;;  %v4097_v34 = vpop.f32.mrb[12].mxu1 }
  0xf6   :  { %v1413_v42 = vpop.f32.mrb[13].mxu0  ;;  %v1422_v51 = vadd.f32 %v3949_v38, %v4908_v44 }
  0xf7   :  { %v2653_v45 = vadd.f32 %v2652_v37, %v2398_v36  ;;  %v1414_v46 = vadd.f32 %v4908_v44, %v1413_v42  ;;  %v3950_v47 = vpop.f32.mrb[14].mxu0 }
  0xf8   :  { %v1416_v49 = vpop.f32.mrb[15].mxu0  ;;  %v1425_v58 = vadd.f32 %v3950_v47, %v4908_v44  ;;  %v2402_v61 = vmax.f32 %v1422_v51, 0.0 }
  0xf9   :  { %v2400_v52 = vmax.f32 %v1414_v46, 0.0  ;;  %v2654_v53 = vadd.f32 %v2653_v45, %v2399_v41  ;;  %v1417_v54 = vadd.f32 %v4908_v44, %v1416_v49  ;;  %v2014_v41 = vadd.f32 %v4097_v34, %v4908_v44 }
  0xfa   :  { %4056 = vmatmul.mubr.msk.bf16.gmra.mrb[120].mxu0 %vm946_vm0, %v4338_v39  ;;  %v2403_v2 = vmax.f32 %v1425_v58, 0.0 }
  0xfb   :  { %v2655_v57 = vadd.f32 %v2654_v53, %v2400_v52  ;;  %v2401_v59 = vmax.f32 %v1417_v54, 0.0  ;;  %4059 = vmatprep.mubr.msk.bf16.mxu0 %vm946_vm0, %v4341_v40  ;;  %v2005_v40 = vpop.f32.mrb[13].mxu1 }
  0xfc   :  { %v2006_v42 = vadd.f32 %v4908_v44, %v2005_v40  ;;  %v4098_v45 = vpop.f32.mrb[14].mxu1 }
  0xfd   :  { %v2656_v62 = vadd.f32 %v2655_v57, %v2401_v59  ;;  %v3953_v63 = vpop.f32.mrb[16].mxu0  ;;  %v2008_v49 = vpop.f32.mrb[15].mxu1  ;;  %v2017_v52 = vadd.f32 %v4098_v45, %v4908_v44 }
  0xfe   :  { %v1429_v0 = vpop.f32.mrb[17].mxu0  ;;  %v1438_v9 = vadd.f32 %v3953_v63, %v4908_v44  ;;  %v2548_v51 = vmax.f32 %v2006_v42, 0.0  ;;  %v2009_v53 = vadd.f32 %v4908_v44, %v2008_v49 }
  0xff   :  { %v2657_v3 = vadd.f32 %v2656_v62, %v2402_v61  ;;  %v1430_v4 = vadd.f32 %v4908_v44, %v1429_v0  ;;  %v3954_v5 = vpop.f32.mrb[18].mxu0  ;;  %v4350_v61 = vld [vmem:[%s5464_s0 + $0x218] sm:$0xff]   ;;  %v2550_v62 = vmax.f32 %v2014_v41, 0.0 }
 0x100   :  { %v1432_v7 = vpop.f32.mrb[19].mxu0  ;;  %v1441_v16 = vadd.f32 %v3954_v5, %v4908_v44  ;;  %v2406_v20 = vmax.f32 %v1438_v9, 0.0  ;;  %v2549_v63 = vmax.f32 %v2009_v53, 0.0  ;;  %v4101_v9 = vpop.f32.mrb[16].mxu1 }
 0x101   :  { %v2404_v10 = vmax.f32 %v1430_v4, 0.0  ;;  %v2658_v11 = vadd.f32 %v2657_v3, %v2403_v2  ;;  %v1433_v12 = vadd.f32 %v4908_v44, %v1432_v7  ;;  %v4353_v4 = vld [vmem:[%s5464_s0 + $0x220] sm:$0xff]   ;;  %v2030_v19 = vadd.f32 %v4101_v9, %v4908_v44 }
 0x102   :  { %4060 = vmatmul.mubr.msk.bf16.gmra.mrb[124].mxu0 %vm946_vm0, %v4342_v1  ;;  %v2407_v26 = vmax.f32 %v1441_v16, 0.0  ;;  %v2829_v7 = vadd.f32 %v2549_v63, %v2548_v51  ;;  %v2021_v16 = vpop.f32.mrb[17].mxu1 }
 0x103   :  { %v2659_v15 = vadd.f32 %v2658_v11, %v2404_v10  ;;  %v2405_v17 = vmax.f32 %v1433_v12, 0.0  ;;  %4063 = vmatprep.mubr.msk.bf16.mxu0 %vm946_vm0, %v4345_v6  ;;  %v2551_v6 = vmax.f32 %v2017_v52, 0.0 }
 0x105   :  { %v2660_v21 = vadd.f32 %v2659_v15, %v2405_v17  ;;  %v3957_v22 = vpop.f32.mrb[20].mxu0  ;;  %v2830_v17 = vadd.f32 %v2829_v7, %v2550_v62 }
 0x106   :  { %v1445_v23 = vpop.f32.mrb[21].mxu0  ;;  %v1454_v36 = vadd.f32 %v3957_v22, %v4908_v44 }
 0x107   :  { %v2661_v27 = vadd.f32 %v2660_v21, %v2406_v20  ;;  %v1446_v28 = vadd.f32 %v4908_v44, %v1445_v23  ;;  %v3958_v29 = vpop.f32.mrb[22].mxu0  ;;  %v2022_v20 = vadd.f32 %v4908_v44, %v2021_v16  ;;  %v4102_v21 = vpop.f32.mrb[18].mxu1 }
 0x108   :  { %v1448_v33 = vpop.f32.mrb[23].mxu0  ;;  %v1457_v47 = vadd.f32 %v3958_v29, %v4908_v44  ;;  %v2410_v54 = vmax.f32 %v1454_v36, 0.0  ;;  %v2033_v29 = vadd.f32 %v4102_v21, %v4908_v44 }
 0x109   :  { %v2408_v37 = vmax.f32 %v1446_v28, 0.0  ;;  %v2662_v38 = vadd.f32 %v2661_v27, %v2407_v26  ;;  %v1449_v39 = vadd.f32 %v4908_v44, %v1448_v33  ;;  %v2024_v26 = vpop.f32.mrb[19].mxu1  ;;  %v2552_v27 = vmax.f32 %v2022_v20, 0.0 }
 0x10a   :  { %4064 = vmatmul.mubr.msk.bf16.gmra.mrb[128].mxu0 %vm946_vm0, %v4346_v24  ;;  %v2411_v0 = vmax.f32 %v1457_v47, 0.0  ;;  %v2831_v28 = vadd.f32 %v2830_v17, %v2551_v6  ;;  %v2555_v51 = vmax.f32 %v2033_v29, 0.0  ;;  %v4105_v53 = vpop.f32.mrb[20].mxu1  ;;  %v4358_v17 = vld [vmem:[%s5464_s0 + $0x238] sm:$0xff]  }
 0x10b   :  { %v2663_v46 = vadd.f32 %v2662_v38, %v2408_v37  ;;  %v2409_v48 = vmax.f32 %v1449_v39, 0.0  ;;  %4067 = vmatprep.mubr.msk.bf16.mxu0 %vm946_vm0, %v4349_v31  ;;  %v2025_v31 = vadd.f32 %v4908_v44, %v2024_v26  ;;  %v4354_v38 = vld [vmem:[%s5464_s0 + $0x228] sm:$0xff]   ;;  %v2554_v39 = vmax.f32 %v2030_v19, 0.0 }
 0x10c   :  { %v2832_v40 = vadd.f32 %v2831_v28, %v2552_v27  ;;  %v2046_v63 = vadd.f32 %v4105_v53, %v4908_v44  ;;  %v4361_v27 = vld [vmem:[%s5464_s0 + $0x240] sm:$0xff]  }
 0x10d   :  { %v2664_v57 = vadd.f32 %v2663_v46, %v2409_v48  ;;  %v3961_v58 = vpop.f32.mrb[24].mxu0  ;;  %v2553_v41 = vmax.f32 %v2025_v31, 0.0  ;;  %v4357_v48 = vld [vmem:[%s5464_s0 + $0x230] sm:$0xff]  }
 0x10e   :  { %v1461_v59 = vpop.f32.mrb[25].mxu0  ;;  %v1470_v10 = vadd.f32 %v3961_v58, %v4908_v44  ;;  %v2558_v19 = vmax.f32 %v2046_v63, 0.0 }
 0x10f   :  { %v2665_v1 = vadd.f32 %v2664_v57, %v2410_v54  ;;  %v1462_v2 = vadd.f32 %v4908_v44, %v1461_v59  ;;  %v3962_v3 = vpop.f32.mrb[26].mxu0  ;;  %v2833_v52 = vadd.f32 %v2832_v40, %v2553_v41 }
 0x110   :  { %v1464_v5 = vpop.f32.mrb[27].mxu0  ;;  %v1473_v23 = vadd.f32 %v3962_v3, %v4908_v44  ;;  %v2414_v33 = vmax.f32 %v1470_v10, 0.0 }
 0x111   :  { %v2412_v11 = vmax.f32 %v1462_v2, 0.0  ;;  %v2666_v12 = vadd.f32 %v2665_v1, %v2411_v0  ;;  %v1465_v15 = vadd.f32 %v4908_v44, %v1464_v5  ;;  %v2834_v62 = vadd.f32 %v2833_v52, %v2554_v39 }
 0x112   :  { %4068 = vmatmul.mubr.msk.bf16.gmra.mrb[132].mxu0 %vm946_vm0, %v4350_v61  ;;  %v2415_v42 = vmax.f32 %v1473_v23, 0.0  ;;  %v2037_v61 = vpop.f32.mrb[21].mxu1 }
 0x113   :  { %v2667_v22 = vadd.f32 %v2666_v12, %v2412_v11  ;;  %v2413_v24 = vmax.f32 %v1465_v15, 0.0  ;;  %4071 = vmatprep.mubr.msk.bf16.mxu0 %vm946_vm0, %v4353_v4  ;;  %v2038_v0 = vadd.f32 %v4908_v44, %v2037_v61  ;;  %v4106_v1 = vpop.f32.mrb[22].mxu1  ;;  %v2835_v7 = vadd.f32 %v2834_v62, %v2555_v51  ;;  %v4362_v61 = vld [vmem:[%s5464_s0 + $0x248] sm:$0xff]  }
 0x114   :  { %v2040_v5 = vpop.f32.mrb[23].mxu1  ;;  %v2049_v9 = vadd.f32 %v4106_v1, %v4908_v44 }
 0x115   :  { %v2668_v34 = vadd.f32 %v2667_v22, %v2413_v24  ;;  %v3965_v36 = vpop.f32.mrb[28].mxu0  ;;  %v2556_v6 = vmax.f32 %v2038_v0, 0.0  ;;  %v2041_v10 = vadd.f32 %v4908_v44, %v2040_v5 }
 0x116   :  { %v1477_v37 = vpop.f32.mrb[29].mxu0  ;;  %v1486_v54 = vadd.f32 %v3965_v36, %v4908_v44  ;;  %v2559_v29 = vmax.f32 %v2049_v9, 0.0 }
 0x117   :  { %v2669_v45 = vadd.f32 %v2668_v34, %v2414_v33  ;;  %v1478_v46 = vadd.f32 %v4908_v44, %v1477_v37  ;;  %v3966_v47 = vpop.f32.mrb[30].mxu0  ;;  %v2836_v20 = vadd.f32 %v2835_v7, %v2556_v6  ;;  %v2557_v21 = vmax.f32 %v2041_v10, 0.0  ;;  %v4109_v33 = vpop.f32.mrb[24].mxu1 }
 0x118   :  { %v1480_v49 = vpop.f32.mrb[31].mxu0  ;;  %v1489_v3 = vadd.f32 %v3966_v47, %v4908_v44  ;;  %v2418_v11 = vmax.f32 %v1486_v54, 0.0  ;;  %v2062_v40 = vadd.f32 %v4109_v33, %v4908_v44 }
 0x119   :  { %v2416_v57 = vmax.f32 %v1478_v46, 0.0  ;;  %v2670_v58 = vadd.f32 %v2669_v45, %v2415_v42  ;;  %v1481_v59 = vadd.f32 %v4908_v44, %v1480_v49  ;;  %v2837_v31 = vadd.f32 %v2836_v20, %v2557_v21 }
 0x11a   :  { %4072 = vmatmul.mubr.msk.bf16.gmra.mrb[136].mxu0 %vm946_vm0, %v4354_v38  ;;  %v2419_v22 = vmax.f32 %v1489_v3, 0.0  ;;  %v2053_v38 = vpop.f32.mrb[25].mxu1  ;;  %v2562_v62 = vmax.f32 %v2062_v40, 0.0 }
 0x11b   :  { %v2671_v2 = vadd.f32 %v2670_v58, %v2416_v57  ;;  %v2417_v4 = vmax.f32 %v1481_v59, 0.0  ;;  %4075 = vmatprep.mubr.msk.bf16.mxu0 %vm946_vm0, %v4357_v48  ;;  %v2838_v39 = vadd.f32 %v2837_v31, %v2558_v19  ;;  %v2054_v41 = vadd.f32 %v4908_v44, %v2053_v38  ;;  %v4110_v42 = vpop.f32.mrb[26].mxu1 }
 0x11c   :  { %v2056_v48 = vpop.f32.mrb[27].mxu1  ;;  %v2065_v52 = vadd.f32 %v4110_v42, %v4908_v44 }
 0x11d   :  { %v2672_v12 = vadd.f32 %v2671_v2, %v2417_v4  ;;  %v3969_v15 = vpop.f32.mrb[32].mxu0  ;;  %v2560_v49 = vmax.f32 %v2054_v41, 0.0  ;;  %v2839_v51 = vadd.f32 %v2838_v39, %v2559_v29  ;;  %v2057_v53 = vadd.f32 %v4908_v44, %v2056_v48  ;;  %v4113_v9 = vpop.f32.mrb[28].mxu1 }
 0x11e   :  { %v1493_v16 = vpop.f32.mrb[33].mxu0  ;;  %v1502_v36 = vadd.f32 %v3969_v15, %v4908_v44  ;;  %v2563_v6 = vmax.f32 %v2065_v52, 0.0  ;;  %v2078_v19 = vadd.f32 %v4113_v9, %v4908_v44 }
 0x11f   :  { %v2673_v23 = vadd.f32 %v2672_v12, %v2418_v11  ;;  %v1494_v24 = vadd.f32 %v4908_v44, %v1493_v16  ;;  %v3970_v26 = vpop.f32.mrb[34].mxu0  ;;  %v2840_v63 = vadd.f32 %v2839_v51, %v2560_v49  ;;  %v2561_v0 = vmax.f32 %v2057_v53, 0.0  ;;  %v2069_v16 = vpop.f32.mrb[29].mxu1 }
 0x120   :  { %v1496_v28 = vpop.f32.mrb[35].mxu0  ;;  %v1505_v46 = vadd.f32 %v3970_v26, %v4908_v44  ;;  %v2422_v54 = vmax.f32 %v1502_v36, 0.0  ;;  %v2070_v20 = vadd.f32 %v4908_v44, %v2069_v16  ;;  %v4114_v21 = vpop.f32.mrb[30].mxu1  ;;  %v2566_v39 = vmax.f32 %v2078_v19, 0.0 }
 0x121   :  { %v5072_v34 = vadd.f32 %v2673_v23, %v2419_v22  ;;  %v1497_v37 = vadd.f32 %v4908_v44, %v1496_v28  ;;  %v2420_v45 = vmax.f32 %v1494_v24, 0.0  ;;  %v2841_v7 = vadd.f32 %v2840_v63, %v2561_v0  ;;  %v2072_v26 = vpop.f32.mrb[31].mxu1 }
 0x122   :  { %4076 = vmatmul.mubr.msk.bf16.gmra.mrb[140].mxu0 %vm946_vm0, %v4358_v17  ;;  %v2423_v1 = vmax.f32 %v1505_v46, 0.0  ;;  %v2081_v29 = vadd.f32 %v4114_v21, %v4908_v44  ;;  %v2073_v31 = vadd.f32 %v4908_v44, %v2072_v26  ;;  %v4117_v52 = vpop.f32.mrb[32].mxu1  ;;  %v4370_v26 = vld [vmem:[%s5466_s3 + $0x18] sm:$0xff]  }
 0x123   :  { %v2421_v47 = vmax.f32 %v1497_v37, 0.0  ;;  %4079 = vmatprep.mubr.msk.bf16.mxu0 %vm946_vm0, %v4361_v27  ;;  %v2842_v17 = vadd.f32 %v2841_v7, %v2562_v62  ;;  %v2564_v27 = vmax.f32 %v2070_v20, 0.0  ;;  %v2094_v62 = vadd.f32 %v4117_v52, %v4908_v44 }
 0x124   :  { %v2565_v41 = vmax.f32 %v2073_v31, 0.0  ;;  %v2567_v49 = vmax.f32 %v2081_v29, 0.0 }
 0x125   :  { %v2681_v57 = vadd.f32 %v2421_v47, %v2420_v45  ;;  %v3973_v58 = vpop.f32.mrb[36].mxu0  ;;  %v2843_v28 = vadd.f32 %v2842_v17, %v2563_v6  ;;  %v2570_v17 = vmax.f32 %v2094_v62, 0.0 }
 0x126   :  { %v1509_v59 = vpop.f32.mrb[37].mxu0  ;;  %v1518_v10 = vadd.f32 %v3973_v58, %v4908_v44 }
 0x127   :  { %v2682_v2 = vadd.f32 %v2681_v57, %v2422_v54  ;;  %v1510_v3 = vadd.f32 %v4908_v44, %v1509_v59  ;;  %v3974_v4 = vpop.f32.mrb[38].mxu0  ;;  %v2844_v40 = vadd.f32 %v2843_v28, %v2564_v27  ;;  %v2085_v59 = vpop.f32.mrb[33].mxu1 }
 0x128   :  { %v1512_v5 = vpop.f32.mrb[39].mxu0  ;;  %v1521_v23 = vadd.f32 %v3974_v4, %v4908_v44  ;;  %v2426_v33 = vmax.f32 %v1518_v10, 0.0  ;;  %v2086_v63 = vadd.f32 %v4908_v44, %v2085_v59  ;;  %v4118_v0 = vpop.f32.mrb[34].mxu1 }
 0x129   :  { %v2424_v11 = vmax.f32 %v1510_v3, 0.0  ;;  %v2683_v12 = vadd.f32 %v2682_v2, %v2423_v1  ;;  %v1513_v15 = vadd.f32 %v4908_v44, %v1512_v5  ;;  %v2845_v51 = vadd.f32 %v2844_v40, %v2565_v41  ;;  %v2088_v4 = vpop.f32.mrb[35].mxu1 }
 0x12a   :  { %4080 = vmatmul.mubr.msk.bf16.gmra.mrb[144].mxu0 %vm946_vm0, %v4362_v61  ;;  %v2427_v42 = vmax.f32 %v1521_v23, 0.0  ;;  %v2568_v5 = vmax.f32 %v2086_v63, 0.0  ;;  %v2097_v7 = vadd.f32 %v4118_v0, %v4908_v44  ;;  %v2089_v9 = vadd.f32 %v4908_v44, %v2088_v4  ;;  %v4121_v31 = vpop.f32.mrb[36].mxu1 }
 0x12b   :  { %v2684_v22 = vadd.f32 %v2683_v12, %v2424_v11  ;;  %v2425_v24 = vmax.f32 %v1513_v15, 0.0  ;;  %v2846_v61 = vadd.f32 %v2845_v51, %v2566_v39  ;;  %v4369_v15 = vld [vmem:[%s5466_s3 + $0x10] sm:$0xff]   ;;  %v2101_v39 = vpop.f32.mrb[37].mxu1  ;;  %v2110_v41 = vadd.f32 %v4121_v31, %v4908_v44 }
 0x12c   :  { %v2569_v20 = vmax.f32 %v2089_v9, 0.0  ;;  %4196 = vmatpush3.bf16.msra.mxu1 %v4369_v15  ;;  %v2571_v28 = vmax.f32 %v2097_v7, 0.0 }
 0x12d   :  { %v2685_v36 = vadd.f32 %v2684_v22, %v2425_v24  ;;  %v3977_v37 = vpop.f32.mrb[40].mxu0  ;;  %v2847_v6 = vadd.f32 %v2846_v61, %v2567_v49  ;;  %4197 = vmatprep.subr.bf16.mxu1 %v4435_v43  ;;  %v2574_v62 = vmax.f32 %v2110_v41, 0.0 }
 0x12e   :  { %v1525_v38 = vpop.f32.mrb[41].mxu0  ;;  %v1534_v53 = vadd.f32 %v3977_v37, %v4908_v44 }
 0x12f   :  { %v2686_v45 = vadd.f32 %v2685_v36, %v2426_v33  ;;  %v1526_v46 = vadd.f32 %v4908_v44, %v1525_v38  ;;  %v3978_v47 = vpop.f32.mrb[42].mxu0  ;;  %v2848_v19 = vadd.f32 %v2847_v6, %v2568_v5 }
 0x130   :  { %v1528_v48 = vpop.f32.mrb[43].mxu0  ;;  %v1537_v2 = vadd.f32 %v3978_v47, %v4908_v44  ;;  %v2430_v10 = vmax.f32 %v1534_v53, 0.0  ;;  %4198 = vmatpush3.bf16.msra.mxu1 %v4370_v26 }
 0x131   :  { %v2428_v54 = vmax.f32 %v1526_v46, 0.0  ;;  %v2687_v57 = vadd.f32 %v2686_v45, %v2427_v42  ;;  %v1529_v58 = vadd.f32 %v4908_v44, %v1528_v48  ;;  %v2849_v29 = vadd.f32 %v2848_v19, %v2569_v20  ;;  %v4122_v45 = vpop.f32.mrb[38].mxu1  ;;  %4199 = vmatprep.subr.bf16.mxu1 %v4435_v43 }
 0x132   :  { %v2431_v21 = vmax.f32 %v1537_v2, 0.0  ;;  %v2102_v42 = vadd.f32 %v4908_v44, %v2101_v39  ;;  %v2104_v49 = vpop.f32.mrb[39].mxu1  ;;  %v2113_v53 = vadd.f32 %v4122_v45, %v4908_v44 }
 0x133   :  { %v2688_v1 = vadd.f32 %v2687_v57, %v2428_v54  ;;  %v2429_v3 = vmax.f32 %v1529_v58, 0.0  ;;  %v2850_v40 = vadd.f32 %v2849_v29, %v2570_v17  ;;  %v2105_v54 = vadd.f32 %v4908_v44, %v2104_v49  ;;  %v4125_v9 = vpop.f32.mrb[40].mxu1 }
 0x134   :  { %v2572_v51 = vmax.f32 %v2102_v42, 0.0  ;;  %v2575_v6 = vmax.f32 %v2113_v53, 0.0  ;;  %v2126_v19 = vadd.f32 %v4125_v9, %v4908_v44 }
 0x135   :  { %v2689_v11 = vadd.f32 %v2688_v1, %v2429_v3  ;;  %v3981_v12 = vpop.f32.mrb[44].mxu0  ;;  %v2851_v52 = vadd.f32 %v2850_v40, %v2571_v28  ;;  %v2573_v0 = vmax.f32 %v2105_v54, 0.0 }
 0x136   :  { %v1541_v16 = vpop.f32.mrb[45].mxu0  ;;  %v1550_v33 = vadd.f32 %v3981_v12, %v4908_v44  ;;  %v2578_v39 = vmax.f32 %v2126_v19, 0.0 }
 0x137   :  { %v2690_v22 = vadd.f32 %v2689_v11, %v2430_v10  ;;  %v1542_v23 = vadd.f32 %v4908_v44, %v1541_v16  ;;  %v3982_v24 = vpop.f32.mrb[46].mxu0  ;;  %v2852_v63 = vadd.f32 %v2851_v52, %v2572_v51  ;;  %v2117_v16 = vpop.f32.mrb[41].mxu1 }
 0x138   :  { %v1544_v27 = vpop.f32.mrb[47].mxu0  ;;  %v1553_v47 = vadd.f32 %v3982_v24, %v4908_v44  ;;  %v2434_v57 = vmax.f32 %v1550_v33, 0.0  ;;  %v2118_v20 = vadd.f32 %v4908_v44, %v2117_v16 }
 0x139   :  { %v2432_v36 = vmax.f32 %v1542_v23, 0.0  ;;  %v2691_v37 = vadd.f32 %v2690_v22, %v2431_v21  ;;  %v1545_v38 = vadd.f32 %v4908_v44, %v1544_v27  ;;  %v2853_v7 = vadd.f32 %v2852_v63, %v2573_v0  ;;  %v4126_v21 = vpop.f32.mrb[42].mxu1 }
 0x13a   :  { %v2435_v1 = vmax.f32 %v1553_v47, 0.0  ;;  %v2120_v26 = vpop.f32.mrb[43].mxu1  ;;  %v2576_v27 = vmax.f32 %v2118_v20, 0.0  ;;  %v2129_v29 = vadd.f32 %v4126_v21, %v4908_v44 }
 0x13b   :  { %v2692_v46 = vadd.f32 %v2691_v37, %v2432_v36  ;;  %v2433_v48 = vmax.f32 %v1545_v38, 0.0  ;;  %v2854_v17 = vadd.f32 %v2853_v7, %v2574_v62  ;;  %v2121_v31 = vadd.f32 %v4908_v44, %v2120_v26  ;;  %v4129_v52 = vpop.f32.mrb[44].mxu1 }
 0x13c   :  { %v2579_v49 = vmax.f32 %v2129_v29, 0.0  ;;  %v2142_v62 = vadd.f32 %v4129_v52, %v4908_v44 }
 0x13d   :  { %v2693_v58 = vadd.f32 %v2692_v46, %v2433_v48  ;;  %v3985_v59 = vpop.f32.mrb[48].mxu0  ;;  %v2855_v28 = vadd.f32 %v2854_v17, %v2575_v6  ;;  %v2577_v41 = vmax.f32 %v2121_v31, 0.0 }
 0x13e   :  { %v1557_v61 = vpop.f32.mrb[49].mxu0  ;;  %v1566_v10 = vadd.f32 %v3985_v59, %v4908_v44  ;;  %v2133_v59 = vpop.f32.mrb[45].mxu1  ;;  %v2582_v16 = vmax.f32 %v2142_v62, 0.0 }
 0x13f   :  { %v2694_v2 = vadd.f32 %v2693_v58, %v2434_v57  ;;  %v1558_v3 = vadd.f32 %v4908_v44, %v1557_v61  ;;  %v3986_v4 = vpop.f32.mrb[50].mxu0  ;;  %v2856_v40 = vadd.f32 %v2855_v28, %v2576_v27  ;;  %v2134_v63 = vadd.f32 %v4908_v44, %v2133_v59  ;;  %v4130_v0 = vpop.f32.mrb[46].mxu1 }
 0x140   :  { %v1560_v5 = vpop.f32.mrb[51].mxu0  ;;  %v1569_v23 = vadd.f32 %v3986_v4, %v4908_v44  ;;  %v2438_v33 = vmax.f32 %v1566_v10, 0.0  ;;  %v2136_v4 = vpop.f32.mrb[47].mxu1  ;;  %v2145_v7 = vadd.f32 %v4130_v0, %v4908_v44 }
 0x141   :  { %v2436_v11 = vmax.f32 %v1558_v3, 0.0  ;;  %v2695_v12 = vadd.f32 %v2694_v2, %v2435_v1  ;;  %v1561_v15 = vadd.f32 %v4908_v44, %v1560_v5  ;;  %v2857_v51 = vadd.f32 %v2856_v40, %v2577_v41  ;;  %v4133_v27 = vpop.f32.mrb[48].mxu1 }
 0x142   :  { %v2439_v42 = vmax.f32 %v1569_v23, 0.0  ;;  %v2580_v6 = vmax.f32 %v2134_v63, 0.0  ;;  %v2137_v9 = vadd.f32 %v4908_v44, %v2136_v4 }
 0x143   :  { %v2696_v22 = vadd.f32 %v2695_v12, %v2436_v11  ;;  %v2437_v24 = vmax.f32 %v1561_v15, 0.0  ;;  %v2858_v61 = vadd.f32 %v2857_v51, %v2578_v39  ;;  %v2158_v39 = vadd.f32 %v4133_v27, %v4908_v44 }
 0x144   :  { %v2581_v17 = vmax.f32 %v2137_v9, 0.0 }
 0x145   :  { %v2697_v36 = vadd.f32 %v2696_v22, %v2437_v24  ;;  %v3989_v37 = vpop.f32.mrb[52].mxu0  ;;  %v5133_v5 = vadd.f32 %v2858_v61, %v2579_v49  ;;  %v2583_v24 = vmax.f32 %v2145_v7, 0.0  ;;  %v2586_v62 = vmax.f32 %v2158_v39, 0.0 }
 0x146   :  { %v1573_v38 = vpop.f32.mrb[53].mxu0  ;;  %v1582_v53 = vadd.f32 %v3989_v37, %v4908_v44  ;;  %v2866_v26 = vadd.f32 %v2581_v17, %v2580_v6  ;;  %v2675_v37 = vrot.slane %v5072_v34, 4 }
 0x147   :  { %v2698_v45 = vadd.f32 %v2697_v36, %v2438_v33  ;;  %v1574_v46 = vadd.f32 %v4908_v44, %v1573_v38  ;;  %v3990_v47 = vpop.f32.mrb[54].mxu0  ;;  %v2149_v36 = vpop.f32.mrb[49].mxu1 }
 0x148   :  { %v1576_v48 = vpop.f32.mrb[55].mxu0  ;;  %v1585_v2 = vadd.f32 %v3990_v47, %v4908_v44  ;;  %v2442_v10 = vmax.f32 %v1582_v53, 0.0  ;;  %v2867_v38 = vadd.f32 %v2866_v26, %v2582_v16  ;;  %v2150_v40 = vadd.f32 %v4908_v44, %v2149_v36  ;;  %v4134_v41 = vpop.f32.mrb[50].mxu1 }
 0x149   :  { %v2440_v54 = vmax.f32 %v1574_v46, 0.0  ;;  %v2699_v57 = vadd.f32 %v2698_v45, %v2439_v42  ;;  %v1577_v58 = vadd.f32 %v4908_v44, %v1576_v48  ;;  %v2152_v47 = vpop.f32.mrb[51].mxu1  ;;  %v4371_v48 = vld [vmem:[%s5466_s3 + $0x20] sm:$0xff]   ;;  %v2161_v52 = vadd.f32 %v4134_v41, %v4908_v44 }
 0x14a   :  { %v2443_v19 = vmax.f32 %v1585_v2, 0.0  ;;  %v2584_v49 = vmax.f32 %v2150_v40, 0.0  ;;  %v2868_v51 = vadd.f32 %v2867_v38, %v2583_v24  ;;  %v2153_v53 = vadd.f32 %v4908_v44, %v2152_v47  ;;  %4200 = vmatpush3.bf16.msra.mxu1 %v4371_v48  ;;  %v5162_v48 = vld [vmem:[%s5465_s2] ss:$0 sm:$0xff] }
 0x14b   :  { %v2700_v1 = vadd.f32 %v2699_v57, %v2440_v54  ;;  %v2441_v3 = vmax.f32 %v1577_v58, 0.0  ;;  %v2676_v59 = vadd.f32 %v2675_v37, %v5072_v34  ;;  %4201 = vmatprep.subr.bf16.mxu1 %v4435_v43  ;;  %v2587_v7 = vmax.f32 %v2161_v52, 0.0 }
 0x14c   :  { %v2869_v63 = vadd.f32 %v2868_v51, %v2584_v49  ;;  %v2585_v0 = vmax.f32 %v2153_v53, 0.0 }
 0x14d   :  { %v2701_v11 = vadd.f32 %v2700_v1, %v2441_v3  ;;  %v3993_v12 = vpop.f32.mrb[56].mxu0  ;;  %v2677_v17 = vrot.slane %v2676_v59, 2 }
 0x14e   :  { %v1589_v15 = vpop.f32.mrb[57].mxu0  ;;  %v1598_v28 = vadd.f32 %v3993_v12, %v4908_v44  ;;  %v2870_v9 = vadd.f32 %v2869_v63, %v2585_v0 }
 0x14f   :  { %v2702_v20 = vadd.f32 %v2701_v11, %v2442_v10  ;;  %v1590_v21 = vadd.f32 %v4908_v44, %v1589_v15  ;;  %v3994_v22 = vpop.f32.mrb[58].mxu0  ;;  %v4137_v10 = vpop.f32.mrb[52].mxu1  ;;  %v2678_v39 = vadd.f32 %v2677_v17, %v2676_v59 }
 0x150   :  { %v1592_v23 = vpop.f32.mrb[59].mxu0  ;;  %v1601_v45 = vadd.f32 %v3994_v22, %v4908_v44  ;;  %v2446_v54 = vmax.f32 %v1598_v28, 0.0  ;;  %v2165_v16 = vpop.f32.mrb[53].mxu1 }
 0x151   :  { %v2444_v29 = vmax.f32 %v1590_v21, 0.0  ;;  %v2703_v31 = vadd.f32 %v2702_v20, %v2443_v19  ;;  %v1593_v33 = vadd.f32 %v4908_v44, %v1592_v23  ;;  %v2871_v19 = vadd.f32 %v2870_v9, %v2586_v62  ;;  %v4138_v22 = vpop.f32.mrb[54].mxu1 }
 0x152   :  { %v2447_v1 = vmax.f32 %v1601_v45, 0.0  ;;  %v2174_v20 = vadd.f32 %v4137_v10, %v4908_v44  ;;  %v2166_v21 = vadd.f32 %v4908_v44, %v2165_v16  ;;  %v2168_v27 = vpop.f32.mrb[55].mxu1  ;;  %v2679_v62 = vrot.slane %v2678_v39, 1 }
 0x153   :  { %v2704_v42 = vadd.f32 %v2703_v31, %v2444_v29  ;;  %v2445_v46 = vmax.f32 %v1593_v33, 0.0  ;;  %v2872_v29 = vadd.f32 %v2871_v19, %v2587_v7  ;;  %v2177_v31 = vadd.f32 %v4138_v22, %v4908_v44 }
 0x154   :  { %v2588_v28 = vmax.f32 %v2166_v21, 0.0  ;;  %v2169_v33 = vadd.f32 %v4908_v44, %v2168_v27  ;;  %v2590_v41 = vmax.f32 %v2174_v20, 0.0  ;;  %v2680_v20 = vadd.f32 %v2679_v62, %v2678_v39 }
 0x155   :  { %v2705_v57 = vadd.f32 %v2704_v42, %v2445_v46  ;;  %v3997_v58 = vpop.f32.mrb[60].mxu0 }
 0x156   :  { %v1605_v61 = vpop.f32.mrb[61].mxu0  ;;  %v1614_v11 = vadd.f32 %v3997_v58, %v4908_v44  ;;  %v2873_v42 = vadd.f32 %v2872_v29, %v2588_v28  ;;  %v2589_v45 = vmax.f32 %v2169_v33, 0.0 }
 0x157   :  { %v2706_v2 = vadd.f32 %v2705_v57, %v2446_v54  ;;  %v1606_v3 = vadd.f32 %v4908_v44, %v1605_v61  ;;  %v3998_v4 = vpop.f32.mrb[62].mxu0  ;;  %v4141_v54 = vpop.f32.mrb[56].mxu1 }
 0x158   :  { %v1608_v6 = vpop.f32.mrb[63].mxu0  ;;  %v1617_v24 = vadd.f32 %v3998_v4, %v4908_v44  ;;  %v2450_v36 = vmax.f32 %v1614_v11, 0.0  ;;  %v2874_v53 = vadd.f32 %v2873_v42, %v2589_v45  ;;  %v2181_v61 = vpop.f32.mrb[57].mxu1  ;;  %v2190_v0 = vadd.f32 %v5162_v48, %v4141_v54 }
 0x159   :  { %v2448_v12 = vmax.f32 %v1606_v3, 0.0  ;;  %v2707_v15 = vadd.f32 %v2706_v2, %v2447_v1  ;;  %v1609_v34 = vadd.f32 %v4908_v44, %v1608_v6  ;;  %v2591_v44 = vmax.f32 %v2177_v31, 0.0  ;;  %v4142_v2 = vpop.f32.mrb[58].mxu1 }
 0x15a   :  { %v2451_v46 = vmax.f32 %v1617_v24, 0.0  ;;  %v2875_v63 = vadd.f32 %v2874_v53, %v2590_v41  ;;  %v2182_v1 = vadd.f32 %v5162_v48, %v2181_v61  ;;  %v2184_v9 = vpop.f32.mrb[59].mxu1  ;;  %v2594_v22 = vmax.f32 %v2190_v0, 0.0 }
 0x15b   :  { %v2708_v23 = vadd.f32 %v2707_v15, %v2448_v12  ;;  %v2449_v26 = vmax.f32 %v1609_v34, 0.0  ;;  %v2193_v12 = vadd.f32 %v5162_v48, %v4142_v2  ;;  %v2185_v15 = vadd.f32 %v5162_v48, %v2184_v9 }
 0x15c   :  { %v2592_v10 = vmax.f32 %v2182_v1, 0.0  ;;  %v2876_v11 = vadd.f32 %v2875_v63, %v2591_v44 }
 0x15d   :  { %v2709_v37 = vadd.f32 %v2708_v23, %v2449_v26  ;;  %v4001_v38 = vpop.f32.mrb[64].mxu0  ;;  %v2593_v24 = vmax.f32 %v2185_v15, 0.0 }
 0x15e   :  { %v1621_v40 = vpop.f32.mrb[65].mxu0  ;;  %v1630_v58 = vadd.f32 %v5162_v48, %v4001_v38  ;;  %v2877_v23 = vadd.f32 %v2876_v11, %v2592_v10 }
 0x15f   :  { %v2710_v47 = vadd.f32 %v2709_v37, %v2450_v36  ;;  %v1622_v49 = vadd.f32 %v5162_v48, %v1621_v40  ;;  %v4002_v51 = vpop.f32.mrb[66].mxu0  ;;  %v2595_v37 = vmax.f32 %v2193_v12, 0.0  ;;  %v4145_v40 = vpop.f32.mrb[60].mxu1 }
 0x160   :  { %v1624_v52 = vpop.f32.mrb[67].mxu0  ;;  %v1633_v6 = vadd.f32 %v5162_v48, %v4002_v51  ;;  %v2454_v16 = vmax.f32 %v1630_v58, 0.0  ;;  %v2878_v38 = vadd.f32 %v2877_v23, %v2593_v24  ;;  %v2206_v51 = vadd.f32 %v5162_v48, %v4145_v40 }
 0x161   :  { %v2711_v57 = vadd.f32 %v2710_v47, %v2451_v46  ;;  %v1625_v59 = vadd.f32 %v5162_v48, %v1624_v52  ;;  %v2452_v4 = vmax.f32 %v1622_v49, 0.0  ;;  %v2197_v46 = vpop.f32.mrb[61].mxu1  ;;  %v2940_v47 = vmul.f32 0.00390625, %v2680_v20 }
 0x162   :  { %v2455_v27 = vmax.f32 %v1633_v6, 0.0  ;;  %v2879_v49 = vadd.f32 %v2878_v38, %v2594_v22  ;;  %v2198_v52 = vadd.f32 %v5162_v48, %v2197_v46  ;;  %v4146_v44 = vpop.f32.mrb[62].mxu1  ;;  %v2598_v9 = vmax.f32 %v2206_v51, 0.0 }
 0x163   :  { %v2712_v3 = vrot.slane %v2711_v57, 4  ;;  %v2453_v7 = vmax.f32 %v1625_v59, 0.0  ;;  %v2200_v59 = vpop.f32.mrb[63].mxu1  ;;  %v2209_v63 = vadd.f32 %v5162_v48, %v4146_v44  ;;  %v2948_v6 = vpack.c.bf16 %v2940_v47, %v2940_v47 }
 0x164   :  { %v2596_v61 = vmax.f32 %v2198_v52, 0.0  ;;  %v2880_v62 = vadd.f32 %v2879_v49, %v2595_v37  ;;  %v2201_v0 = vadd.f32 %v5162_v48, %v2200_v59  ;;  %v4149_v23 = vpop.f32.mrb[64].mxu1 }
 0x165   :  { %v2713_v34 = vadd.f32 %v2712_v3, %v2711_v57  ;;  %v2718_v17 = vadd.f32 %v2453_v7, %v2452_v4  ;;  %v4005_v19 = vpop.f32.mrb[68].mxu0 }
 0x166   :  { %v1637_v21 = vpop.f32.mrb[69].mxu0  ;;  %v1646_v33 = vadd.f32 %v5162_v48, %v4005_v19  ;;  %v2881_v10 = vadd.f32 %v2880_v62, %v2596_v61  ;;  %v2597_v11 = vmax.f32 %v2201_v0, 0.0 }
 0x167   :  { %v2714_v26 = vrot.slane %v2713_v34, 2  ;;  %v2719_v28 = vadd.f32 %v2718_v17, %v2454_v16  ;;  %v1638_v29 = vadd.f32 %v5162_v48, %v1637_v21  ;;  %v4006_v31 = vpop.f32.mrb[70].mxu0  ;;  %v2599_v21 = vmax.f32 %v2209_v63, 0.0 }
 0x168   :  { %v1640_v36 = vpop.f32.mrb[71].mxu0  ;;  %v1649_v57 = vadd.f32 %v5162_v48, %v4006_v31  ;;  %v2458_v2 = vmax.f32 %v1646_v33, 0.0  ;;  %v2882_v22 = vadd.f32 %v2881_v10, %v2597_v11  ;;  %v2987_v31 = vunpack.c.l.b16 %v2948_v6 }
 0x169   :  { %v2715_v41 = vadd.f32 %v2714_v26, %v2713_v34  ;;  %v2456_v42 = vmax.f32 %v1638_v29, 0.0  ;;  %v2720_v45 = vadd.f32 %v2719_v28, %v2455_v27  ;;  %v1641_v39 = vadd.f32 %v5162_v48, %v1640_v36  ;;  %v2213_v29 = vpop.f32.mrb[65].mxu1 }
 0x16a   :  { %v2459_v15 = vmax.f32 %v1649_v57, 0.0  ;;  %v2883_v33 = vadd.f32 %v2882_v22, %v2598_v9  ;;  %v2222_v36 = vadd.f32 %v5162_v48, %v4149_v23  ;;  %v2214_v37 = vadd.f32 %v5162_v48, %v2213_v29  ;;  %v4150_v38 = vpop.f32.mrb[66].mxu1  ;;  %v4372_v57 = vld [vmem:[%s5466_s3 + $0x28] sm:$0xff]  }
 0x16b   :  { %v2716_v53 = vrot.slane %v2715_v41, 1  ;;  %v2721_v54 = vadd.f32 %v2720_v45, %v2456_v42  ;;  %v2457_v58 = vmax.f32 %v1641_v39, 0.0  ;;  %v2216_v39 = vpop.f32.mrb[67].mxu1  ;;  %v2225_v49 = vadd.f32 %v5162_v48, %v4150_v38  ;;  %4202 = vmatpush3.bf16.msra.mxu1 %v4372_v57 }
 0x16c   :  { %v2600_v46 = vmax.f32 %v2214_v37, 0.0  ;;  %v2884_v47 = vadd.f32 %v2883_v33, %v2599_v21  ;;  %v2217_v51 = vadd.f32 %v5162_v48, %v2216_v39  ;;  %v2602_v59 = vmax.f32 %v2222_v36, 0.0  ;;  %4203 = vmatprep.subr.bf16.mxu1 %v4435_v43 }
 0x16d   :  { %v2717_v1 = vadd.f32 %v2716_v53, %v2715_v41  ;;  %v2722_v3 = vadd.f32 %v2721_v54, %v2457_v58  ;;  %v4009_v4 = vpop.f32.mrb[72].mxu0 }
 0x16e   :  { %v1653_v7 = vpop.f32.mrb[73].mxu0  ;;  %v1662_v19 = vadd.f32 %v5162_v48, %v4009_v4  ;;  %v2885_v61 = vadd.f32 %v2884_v47, %v2600_v46  ;;  %v2601_v62 = vmax.f32 %v2217_v51, 0.0  ;;  %v2603_v4 = vmax.f32 %v2225_v49, 0.0 }
 0x16f   :  { %v2941_v12 = vmul.f32 0.00390625, %v2717_v1  ;;  %v2723_v34 = vadd.f32 %v2722_v3, %v2458_v2  ;;  %v1654_v16 = vadd.f32 %v5162_v48, %v1653_v7  ;;  %v4010_v17 = vpop.f32.mrb[74].mxu0  ;;  %v4153_v7 = vpop.f32.mrb[68].mxu1 }
 0x170   :  { %v1656_v20 = vpop.f32.mrb[75].mxu0  ;;  %v1665_v42 = vadd.f32 %v5162_v48, %v4010_v17  ;;  %v2462_v44 = vmax.f32 %v1662_v19, 0.0  ;;  %v2886_v6 = vadd.f32 %v2885_v61, %v2601_v62 }
 0x171   :  { %v2949_v24 = vpack.c.bf16 %v2941_v12, %v2941_v12  ;;  %v2460_v26 = vmax.f32 %v1654_v16, 0.0  ;;  %v2724_v27 = vadd.f32 %v2723_v34, %v2459_v15  ;;  %v1657_v28 = vadd.f32 %v5162_v48, %v1656_v20  ;;  %v2229_v15 = vpop.f32.mrb[69].mxu1 }
 0x172   :  { %v2463_v63 = vmax.f32 %v1665_v42, 0.0  ;;  %v2887_v34 = vadd.f32 %v2886_v6, %v2602_v59  ;;  %v2238_v16 = vadd.f32 %v5162_v48, %v4153_v7  ;;  %v2230_v17 = vadd.f32 %v5162_v48, %v2229_v15  ;;  %v4154_v19 = vpop.f32.mrb[70].mxu1 }
 0x173   :  { %v2988_v40 = vunpack.c.l.b16 %v2949_v24  ;;  %v2725_v41 = vadd.f32 %v2724_v27, %v2460_v26  ;;  %v2461_v45 = vmax.f32 %v1657_v28, 0.0  ;;  %v2232_v23 = vpop.f32.mrb[71].mxu1  ;;  %v2241_v27 = vadd.f32 %v5162_v48, %v4154_v19 }
 0x174   :  { %v2604_v24 = vmax.f32 %v2230_v17, 0.0  ;;  %v2888_v26 = vadd.f32 %v2887_v34, %v2603_v4  ;;  %v2233_v28 = vadd.f32 %v5162_v48, %v2232_v23  ;;  %v2606_v37 = vmax.f32 %v2238_v16, 0.0  ;;  %v4157_v51 = vpop.f32.mrb[72].mxu1 }
 0x175   :  { %v5189_v52 = vsel %vm2995_vm1, %v2988_v40, %v2987_v31  ;;  %v2726_v53 = vadd.f32 %v2725_v41, %v2461_v45  ;;  %v4013_v54 = vpop.f32.mrb[76].mxu0  ;;  %v2607_v47 = vmax.f32 %v2241_v27, 0.0  ;;  %v2254_v61 = vadd.f32 %v5162_v48, %v4157_v51 }
 0x176   :  { %v1669_v58 = vpop.f32.mrb[77].mxu0  ;;  %v1678_v9 = vadd.f32 %v5162_v48, %v4013_v54  ;;  %v2889_v38 = vadd.f32 %v2888_v26, %v2604_v24  ;;  %v2605_v40 = vmax.f32 %v2233_v28, 0.0 }
 0x177   :  { %v2727_v0 = vadd.f32 %v2726_v53, %v2462_v44  ;;  %v1670_v1 = vadd.f32 %v5162_v48, %v1669_v58  ;;  %v4014_v2 = vpop.f32.mrb[78].mxu0  ;;  %v2245_v58 = vpop.f32.mrb[73].mxu1  ;;  %v2610_v34 = vmax.f32 %v2254_v61, 0.0 }
 0x178   :  { %v1672_v3 = vpop.f32.mrb[79].mxu0  ;;  %v1681_v21 = vadd.f32 %v5162_v48, %v4014_v2  ;;  %v2466_v29 = vmax.f32 %v1678_v9, 0.0  ;;  %v2890_v49 = vadd.f32 %v2889_v38, %v2605_v40  ;;  %v2246_v62 = vadd.f32 %v5162_v48, %v2245_v58 }
 0x179   :  { %v2464_v10 = vmax.f32 %v1670_v1, 0.0  ;;  %v2728_v11 = vadd.f32 %v2727_v0, %v2463_v63  ;;  %v1673_v12 = vadd.f32 %v5162_v48, %v1672_v3  ;;  %v4158_v63 = vpop.f32.mrb[74].mxu1 }
 0x17a   :  { %v2467_v41 = vmax.f32 %v1681_v21, 0.0  ;;  %v2891_v59 = vadd.f32 %v2890_v49, %v2606_v37  ;;  %v2248_v3 = vpop.f32.mrb[75].mxu1  ;;  %v2608_v4 = vmax.f32 %v2246_v62, 0.0  ;;  %v2257_v7 = vadd.f32 %v5162_v48, %v4158_v63 }
 0x17b   :  { %v2729_v20 = vadd.f32 %v2728_v11, %v2464_v10  ;;  %v2465_v22 = vmax.f32 %v1673_v12, 0.0  ;;  %v2249_v9 = vadd.f32 %v5162_v48, %v2248_v3  ;;  %v4161_v27 = vpop.f32.mrb[76].mxu1 }
 0x17c   :  { %v2892_v6 = vadd.f32 %v2891_v59, %v2607_v47  ;;  %v2611_v24 = vmax.f32 %v2257_v7, 0.0  ;;  %v2270_v38 = vadd.f32 %v5162_v48, %v4161_v27 }
 0x17d   :  { %v2730_v31 = vadd.f32 %v2729_v20, %v2465_v22  ;;  %v4017_v33 = vpop.f32.mrb[80].mxu0  ;;  %v2609_v17 = vmax.f32 %v2249_v9, 0.0 }
 0x17e   :  { %v1685_v36 = vpop.f32.mrb[81].mxu0  ;;  %v1694_v44 = vadd.f32 %v5162_v48, %v4017_v33  ;;  %v2893_v16 = vadd.f32 %v2892_v6, %v2608_v4  ;;  %v2614_v59 = vmax.f32 %v2270_v38, 0.0 }
 0x17f   :  { %v2731_v42 = vadd.f32 %v2730_v31, %v2466_v29  ;;  %v1686_v45 = vadd.f32 %v5162_v48, %v1685_v36  ;;  %v4018_v39 = vpop.f32.mrb[82].mxu0  ;;  %v2261_v36 = vpop.f32.mrb[77].mxu1 }
 0x180   :  { %v1688_v46 = vpop.f32.mrb[83].mxu0  ;;  %v1697_v1 = vadd.f32 %v5162_v48, %v4018_v39  ;;  %v2470_v10 = vmax.f32 %v1694_v44, 0.0  ;;  %v2894_v26 = vadd.f32 %v2893_v16, %v2609_v17  ;;  %v2262_v40 = vadd.f32 %v5162_v48, %v2261_v36 }
 0x181   :  { %v2468_v53 = vmax.f32 %v1686_v45, 0.0  ;;  %v2732_v54 = vadd.f32 %v2731_v42, %v2467_v41  ;;  %v1689_v57 = vadd.f32 %v5162_v48, %v1688_v46  ;;  %v4162_v41 = vpop.f32.mrb[78].mxu1 }
 0x182   :  { %v2471_v19 = vmax.f32 %v1697_v1, 0.0  ;;  %v2895_v37 = vadd.f32 %v2894_v26, %v2610_v34  ;;  %v2264_v46 = vpop.f32.mrb[79].mxu1  ;;  %v2612_v49 = vmax.f32 %v2262_v40, 0.0  ;;  %v2273_v51 = vadd.f32 %v5162_v48, %v4162_v41 }
 0x183   :  { %v2733_v0 = vadd.f32 %v2732_v54, %v2468_v53  ;;  %v2469_v2 = vmax.f32 %v1689_v57, 0.0  ;;  %v2265_v44 = vadd.f32 %v5162_v48, %v2264_v46  ;;  %v4165_v6 = vpop.f32.mrb[80].mxu1 }
 0x184   :  { %v5217_v47 = vadd.f32 %v2895_v37, %v2611_v24  ;;  %v2615_v3 = vmax.f32 %v2273_v51, 0.0  ;;  %v2286_v34 = vadd.f32 %v5162_v48, %v4165_v6 }
 0x185   :  { %v2734_v11 = vadd.f32 %v2733_v0, %v2469_v2  ;;  %v4021_v12 = vpop.f32.mrb[84].mxu0  ;;  %v2613_v61 = vmax.f32 %v2265_v44, 0.0 }
 0x186   :  { %v1701_v15 = vpop.f32.mrb[85].mxu0  ;;  %v1710_v28 = vadd.f32 %v5162_v48, %v4021_v12  ;;  %v2277_v12 = vpop.f32.mrb[81].mxu1  ;;  %v2618_v36 = vmax.f32 %v2286_v34, 0.0 }
 0x187   :  { %v2735_v20 = vadd.f32 %v2734_v11, %v2470_v10  ;;  %v1702_v21 = vadd.f32 %v5162_v48, %v1701_v15  ;;  %v4022_v22 = vpop.f32.mrb[86].mxu0  ;;  %v2903_v4 = vadd.f32 %v2613_v61, %v2612_v49  ;;  %v2278_v16 = vadd.f32 %v5162_v48, %v2277_v12  ;;  %v4166_v17 = vpop.f32.mrb[82].mxu1 }
 0x188   :  { %v1704_v23 = vpop.f32.mrb[87].mxu0  ;;  %v1713_v45 = vadd.f32 %v5162_v48, %v4022_v22  ;;  %v2474_v53 = vmax.f32 %v1710_v28, 0.0  ;;  %v2280_v22 = vpop.f32.mrb[83].mxu1  ;;  %v2289_v26 = vadd.f32 %v5162_v48, %v4166_v17 }
 0x189   :  { %v2472_v29 = vmax.f32 %v1702_v21, 0.0  ;;  %v2736_v31 = vadd.f32 %v2735_v20, %v2471_v19  ;;  %v1705_v33 = vadd.f32 %v5162_v48, %v1704_v23  ;;  %v2904_v15 = vadd.f32 %v2903_v4, %v2614_v59  ;;  %v4169_v51 = vpop.f32.mrb[84].mxu1 }
 0x18a   :  { %v2475_v62 = vmax.f32 %v1713_v45, 0.0  ;;  %v2616_v23 = vmax.f32 %v2278_v16, 0.0  ;;  %v2281_v27 = vadd.f32 %v5162_v48, %v2280_v22  ;;  %v2619_v46 = vmax.f32 %v2289_v26, 0.0 }
 0x18b   :  { %v2737_v42 = vadd.f32 %v2736_v31, %v2472_v29  ;;  %v2473_v39 = vmax.f32 %v1705_v33, 0.0  ;;  %v2905_v24 = vadd.f32 %v2904_v15, %v2615_v3  ;;  %v2302_v61 = vadd.f32 %v5162_v48, %v4169_v51 }
 0x18c   :  { %v2617_v38 = vmax.f32 %v2281_v27, 0.0 }
 0x18d   :  { %v2738_v54 = vadd.f32 %v2737_v42, %v2473_v39  ;;  %v4025_v57 = vpop.f32.mrb[88].mxu0  ;;  %v2906_v37 = vadd.f32 %v2905_v24, %v2616_v23  ;;  %v2622_v34 = vmax.f32 %v2302_v61, 0.0  ;;  %v4373_v23 = vld [vmem:[%s5466_s3 + $0x30] sm:$0xff]  }
 0x18e   :  { %v1717_v58 = vpop.f32.mrb[89].mxu0  ;;  %v1726_v7 = vadd.f32 %v5162_v48, %v4025_v57  ;;  %4204 = vmatpush3.bf16.msra.mxu1 %v4373_v23 }
 0x18f   :  { %v2739_v63 = vadd.f32 %v2738_v54, %v2474_v53  ;;  %v1718_v0 = vadd.f32 %v5162_v48, %v1717_v58  ;;  %v4026_v1 = vpop.f32.mrb[90].mxu0  ;;  %v2907_v49 = vadd.f32 %v2906_v37, %v2617_v38  ;;  %v2293_v58 = vpop.f32.mrb[85].mxu1  ;;  %v4374_v37 = vld [vmem:[%s5466_s3 + $0x38] sm:$0xff]   ;;  %4205 = vmatprep.subr.bf16.mxu1 %v4435_v43 }
 0x190   :  { %v1720_v2 = vpop.f32.mrb[91].mxu0  ;;  %v1729_v20 = vadd.f32 %v5162_v48, %v4026_v1  ;;  %v2478_v28 = vmax.f32 %v1726_v7, 0.0 }
 0x191   :  { %v2476_v9 = vmax.f32 %v1718_v0, 0.0  ;;  %v2740_v10 = vadd.f32 %v2739_v63, %v2475_v62  ;;  %v1721_v11 = vadd.f32 %v5162_v48, %v1720_v2  ;;  %v2908_v59 = vadd.f32 %v2907_v49, %v2618_v36  ;;  %v4170_v63 = vpop.f32.mrb[86].mxu1 }
 0x192   :  { %v2479_v40 = vmax.f32 %v1729_v20, 0.0  ;;  %v2294_v62 = vadd.f32 %v5162_v48, %v2293_v58  ;;  %v2296_v3 = vpop.f32.mrb[87].mxu1  ;;  %v2305_v7 = vadd.f32 %v5162_v48, %v4170_v63  ;;  %4206 = vmatpush3.bf16.msra.mxu1 %v4374_v37 }
 0x193   :  { %v2741_v19 = vadd.f32 %v2740_v10, %v2476_v9  ;;  %v2477_v21 = vmax.f32 %v1721_v11, 0.0  ;;  %v2909_v6 = vadd.f32 %v2908_v59, %v2619_v46  ;;  %v2297_v9 = vadd.f32 %v5162_v48, %v2296_v3  ;;  %4211 = vmatprep.subr.bf16.mxu1 %v4435_v43 }
 0x194   :  { %v2620_v4 = vmax.f32 %v2294_v62, 0.0  ;;  %v2623_v26 = vmax.f32 %v2305_v7, 0.0 }
 0x195   :  { %v2742_v29 = vadd.f32 %v2741_v19, %v2477_v21  ;;  %v4029_v31 = vpop.f32.mrb[92].mxu0  ;;  %v2621_v17 = vmax.f32 %v2297_v9, 0.0 }
 0x196   :  { %v1733_v33 = vpop.f32.mrb[93].mxu0  ;;  %v1742_v44 = vadd.f32 %v5162_v48, %v4029_v31  ;;  %v2910_v16 = vadd.f32 %v2909_v6, %v2620_v4 }
 0x197   :  { %v2743_v41 = vadd.f32 %v2742_v29, %v2478_v28  ;;  %v1734_v42 = vadd.f32 %v5162_v48, %v1733_v33  ;;  %v4030_v45 = vpop.f32.mrb[94].mxu0  ;;  %v4173_v28 = vpop.f32.mrb[88].mxu1 }
 0x198   :  { %v1736_v39 = vpop.f32.mrb[95].mxu0  ;;  %v1745_v1 = vadd.f32 %v5162_v48, %v4030_v45  ;;  %v2482_v10 = vmax.f32 %v1742_v44, 0.0  ;;  %v2911_v27 = vadd.f32 %v2910_v16, %v2621_v17  ;;  %v2309_v36 = vpop.f32.mrb[89].mxu1 }
 0x199   :  { %v2480_v53 = vmax.f32 %v1734_v42, 0.0  ;;  %v2744_v54 = vadd.f32 %v2743_v41, %v2479_v40  ;;  %v1737_v57 = vadd.f32 %v5162_v48, %v1736_v39  ;;  %v2318_v40 = vadd.f32 %v5162_v48, %v4173_v28  ;;  %v4174_v42 = vpop.f32.mrb[90].mxu1 }
 0x19a   :  { %v2483_v19 = vmax.f32 %v1745_v1, 0.0  ;;  %v2912_v38 = vadd.f32 %v2911_v27, %v2622_v34  ;;  %v2310_v41 = vadd.f32 %v5162_v48, %v2309_v36  ;;  %v2312_v51 = vpop.f32.mrb[91].mxu1 }
 0x19b   :  { %v2745_v0 = vadd.f32 %v2744_v54, %v2480_v53  ;;  %v2481_v2 = vmax.f32 %v1737_v57, 0.0  ;;  %v2321_v54 = vadd.f32 %v5162_v48, %v4174_v42  ;;  %v2313_v57 = vadd.f32 %v5162_v48, %v2312_v51  ;;  %v4177_v34 = vpop.f32.mrb[92].mxu1 }
 0x19c   :  { %v2624_v44 = vmax.f32 %v2310_v41, 0.0  ;;  %v2913_v53 = vadd.f32 %v2912_v38, %v2623_v26  ;;  %v2334_v23 = vadd.f32 %v5162_v48, %v4177_v34 }
 0x19d   :  { %v2746_v11 = vadd.f32 %v2745_v0, %v2481_v2  ;;  %v4033_v12 = vpop.f32.mrb[96].mxu0  ;;  %v2626_v0 = vmax.f32 %v2318_v40, 0.0  ;;  %v2625_v2 = vmax.f32 %v2313_v57, 0.0 }
 0x19e   :  { %v1749_v15 = vpop.f32.mrb[97].mxu0  ;;  %v1758_v31 = vadd.f32 %v5162_v48, %v4033_v12  ;;  %v2914_v1 = vadd.f32 %v2913_v53, %v2624_v44  ;;  %v2627_v12 = vmax.f32 %v2321_v54, 0.0 }
 0x19f   :  { %v2747_v20 = vadd.f32 %v2746_v11, %v2482_v10  ;;  %v1750_v21 = vadd.f32 %v5162_v48, %v1749_v15  ;;  %v4034_v22 = vpop.f32.mrb[98].mxu0 }
 0x1a0   :  { %v1752_v24 = vpop.f32.mrb[99].mxu0  ;;  %v1761_v46 = vadd.f32 %v5162_v48, %v4034_v22  ;;  %v2486_v59 = vmax.f32 %v1758_v31, 0.0  ;;  %v2915_v15 = vadd.f32 %v2914_v1, %v2625_v2 }
 0x1a1   :  { %v2748_v29 = vadd.f32 %v2747_v20, %v2483_v19  ;;  %v1753_v33 = vadd.f32 %v5162_v48, %v1752_v24  ;;  %v2484_v39 = vmax.f32 %v1750_v21, 0.0  ;;  %v2325_v21 = vpop.f32.mrb[93].mxu1 }
 0x1a2   :  { %v2487_v4 = vmax.f32 %v1761_v46, 0.0  ;;  %v2916_v22 = vadd.f32 %v2915_v15, %v2626_v0  ;;  %v2326_v24 = vadd.f32 %v5162_v48, %v2325_v21  ;;  %v4178_v26 = vpop.f32.mrb[94].mxu1 }
 0x1a3   :  { %v2749_v45 = vrot.slane %v2748_v29, 4  ;;  %v2485_v49 = vmax.f32 %v1753_v33, 0.0  ;;  %v2328_v33 = vpop.f32.mrb[95].mxu1  ;;  %v2337_v38 = vadd.f32 %v5162_v48, %v4178_v26 }
 0x1a4   :  { %v2628_v36 = vmax.f32 %v2326_v24, 0.0  ;;  %v2917_v37 = vadd.f32 %v2916_v22, %v2627_v12  ;;  %v2329_v40 = vadd.f32 %v5162_v48, %v2328_v33  ;;  %v4181_v1 = vpop.f32.mrb[96].mxu1 }
 0x1a5   :  { %v2750_v58 = vadd.f32 %v2749_v45, %v2748_v29  ;;  %v2755_v61 = vadd.f32 %v2485_v49, %v2484_v39  ;;  %v4037_v62 = vpop.f32.mrb[100].mxu0  ;;  %v2630_v49 = vmax.f32 %v2334_v23, 0.0 }
 0x1a6   :  { %v1765_v63 = vpop.f32.mrb[101].mxu0  ;;  %v1774_v10 = vadd.f32 %v5162_v48, %v4037_v62  ;;  %v2918_v51 = vadd.f32 %v2917_v37, %v2628_v36  ;;  %v2629_v44 = vmax.f32 %v2329_v40, 0.0 }
 0x1a7   :  { %v2751_v3 = vrot.slane %v2750_v58, 2  ;;  %v2756_v6 = vadd.f32 %v2755_v61, %v2486_v59  ;;  %v1766_v7 = vadd.f32 %v5162_v48, %v1765_v63  ;;  %v4038_v9 = vpop.f32.mrb[102].mxu0  ;;  %v2631_v63 = vmax.f32 %v2337_v38, 0.0 }
 0x1a8   :  { %v1768_v11 = vpop.f32.mrb[103].mxu0  ;;  %v1777_v29 = vadd.f32 %v5162_v48, %v4038_v9  ;;  %v2490_v42 = vmax.f32 %v1774_v10, 0.0  ;;  %v2919_v0 = vadd.f32 %v2918_v51, %v2629_v44  ;;  %v2350_v10 = vadd.f32 %v5162_v48, %v4181_v1 }
 0x1a9   :  { %v2752_v16 = vadd.f32 %v2751_v3, %v2750_v58  ;;  %v2488_v17 = vmax.f32 %v1766_v7, 0.0  ;;  %v2757_v19 = vadd.f32 %v2756_v6, %v2487_v4  ;;  %v1769_v20 = vadd.f32 %v5162_v48, %v1768_v11  ;;  %v2341_v7 = vpop.f32.mrb[97].mxu1 }
 0x1aa   :  { %v2491_v54 = vmax.f32 %v1777_v29, 0.0  ;;  %v2920_v9 = vadd.f32 %v2919_v0, %v2630_v49  ;;  %v2342_v11 = vadd.f32 %v5162_v48, %v2341_v7  ;;  %v4182_v12 = vpop.f32.mrb[98].mxu1 }
 0x1ab   :  { %v2753_v27 = vrot.slane %v2752_v16, 1  ;;  %v2758_v28 = vadd.f32 %v2757_v19, %v2488_v17  ;;  %v2489_v31 = vmax.f32 %v1769_v20, 0.0  ;;  %v2344_v19 = vpop.f32.mrb[99].mxu1  ;;  %v2353_v22 = vadd.f32 %v5162_v48, %v4182_v12 }
 0x1ac   :  { %v2632_v20 = vmax.f32 %v2342_v11, 0.0  ;;  %v2921_v21 = vadd.f32 %v2920_v9, %v2631_v63  ;;  %v2345_v23 = vadd.f32 %v5162_v48, %v2344_v19  ;;  %v4185_v49 = vpop.f32.mrb[100].mxu1 }
 0x1ad   :  { %v2754_v41 = vadd.f32 %v2753_v27, %v2752_v16  ;;  %v2759_v45 = vadd.f32 %v2758_v28, %v2489_v31  ;;  %v4041_v39 = vpop.f32.mrb[104].mxu0  ;;  %v2634_v31 = vmax.f32 %v2350_v10, 0.0 }
 0x1ae   :  { %v1781_v46 = vpop.f32.mrb[105].mxu0  ;;  %v1790_v61 = vadd.f32 %v5162_v48, %v4041_v39  ;;  %v2922_v33 = vadd.f32 %v2921_v21, %v2632_v20  ;;  %v2633_v36 = vmax.f32 %v2345_v23, 0.0  ;;  %v2635_v39 = vmax.f32 %v2353_v22, 0.0 }
 0x1af   :  { %v2942_v53 = vmul.f32 0.00390625, %v2754_v41  ;;  %v2760_v57 = vadd.f32 %v2759_v45, %v2490_v42  ;;  %v1782_v58 = vadd.f32 %v5162_v48, %v1781_v46  ;;  %v4042_v59 = vpop.f32.mrb[106].mxu0 }
 0x1b0   :  { %v1784_v62 = vpop.f32.mrb[107].mxu0  ;;  %v1793_v16 = vadd.f32 %v5162_v48, %v4042_v59  ;;  %v2494_v26 = vmax.f32 %v1790_v61, 0.0  ;;  %v2923_v46 = vadd.f32 %v2922_v33, %v2633_v36 }
 0x1b1   :  { %v2950_v2 = vpack.c.bf16 %v2942_v53, %v2942_v53  ;;  %v2492_v3 = vmax.f32 %v1782_v58, 0.0  ;;  %v2761_v4 = vadd.f32 %v2760_v57, %v2491_v54  ;;  %v1785_v6 = vadd.f32 %v5162_v48, %v1784_v62  ;;  %v2357_v54 = vpop.f32.mrb[101].mxu1 }
 0x1b2   :  { %v2495_v37 = vmax.f32 %v1793_v16, 0.0  ;;  %v2366_v53 = vadd.f32 %v5162_v48, %v4185_v49  ;;  %v2924_v57 = vadd.f32 %v2923_v46, %v2634_v31  ;;  %v2358_v58 = vadd.f32 %v5162_v48, %v2357_v54  ;;  %v4186_v59 = vpop.f32.mrb[102].mxu1 }
 0x1b3   :  { %v2989_v15 = vunpack.c.l.b16 %v2950_v2  ;;  %v2762_v34 = vadd.f32 %v2761_v4, %v2492_v3  ;;  %v2493_v17 = vmax.f32 %v1785_v6, 0.0  ;;  %v2360_v0 = vpop.f32.mrb[103].mxu1  ;;  %v2369_v3 = vadd.f32 %v5162_v48, %v4186_v59 }
 0x1b4   :  { %v2636_v1 = vmax.f32 %v2358_v58, 0.0  ;;  %v2925_v2 = vadd.f32 %v2924_v57, %v2635_v39  ;;  %v2361_v4 = vadd.f32 %v5162_v48, %v2360_v0  ;;  %v2638_v10 = vmax.f32 %v2366_v53, 0.0  ;;  %v4189_v23 = vpop.f32.mrb[104].mxu1 }
 0x1b5   :  { %v5272_v24 = vsel %vm2997_vm3, %v2989_v15, %v5189_v52  ;;  %v2763_v27 = vadd.f32 %v2762_v34, %v2493_v17  ;;  %v4045_v28 = vpop.f32.mrb[108].mxu0  ;;  %v2639_v21 = vmax.f32 %v2369_v3, 0.0  ;;  %v2373_v31 = vpop.f32.mrb[105].mxu1  ;;  %v2382_v36 = vadd.f32 %v5162_v48, %v4189_v23 }
 0x1b6   :  { %v1797_v29 = vpop.f32.mrb[109].mxu0  ;;  %v1806_v42 = vadd.f32 %v5162_v48, %v4045_v28  ;;  %v2926_v12 = vadd.f32 %v2925_v2, %v2636_v1  ;;  %v2637_v15 = vmax.f32 %v2361_v4, 0.0 }
 0x1b7   :  { %v2764_v38 = vadd.f32 %v2763_v27, %v2494_v26  ;;  %v1798_v40 = vadd.f32 %v5162_v48, %v1797_v29  ;;  %v4046_v41 = vpop.f32.mrb[110].mxu0  ;;  %v2642_v57 = vmax.f32 %v2382_v36, 0.0 }
 0x1b8   :  { %v1800_v45 = vpop.f32.mrb[111].mxu0  ;;  %v1809_v62 = vadd.f32 %v5162_v48, %v4046_v41  ;;  %v2498_v6 = vmax.f32 %v1806_v42, 0.0  ;;  %v2927_v22 = vadd.f32 %v2926_v12, %v2637_v15 }
 0x1b9   :  { %v2496_v52 = vmax.f32 %v1798_v40, 0.0  ;;  %v2765_v51 = vadd.f32 %v2764_v38, %v2495_v37  ;;  %v1801_v44 = vadd.f32 %v5162_v48, %v1800_v45  ;;  %v2374_v37 = vadd.f32 %v5162_v48, %v2373_v31  ;;  %v4190_v38 = vpop.f32.mrb[106].mxu1 }
 0x1ba   :  { %v2499_v34 = vmax.f32 %v1809_v62, 0.0  ;;  %v2928_v33 = vadd.f32 %v2927_v22, %v2638_v10  ;;  %v2376_v45 = vpop.f32.mrb[107].mxu1  ;;  %v2385_v49 = vadd.f32 %v5162_v48, %v4190_v38 }
 0x1bb   :  { %v2766_v61 = vadd.f32 %v2765_v51, %v2496_v52  ;;  %v2497_v63 = vmax.f32 %v1801_v44, 0.0  ;;  %v2640_v39 = vmax.f32 %v2374_v37, 0.0  ;;  %v2377_v52 = vadd.f32 %v5162_v48, %v2376_v45 }
 0x1bc   :  { %v2929_v46 = vadd.f32 %v2928_v33, %v2639_v21  ;;  %v2643_v2 = vmax.f32 %v2385_v49, 0.0 }
 0x1bd   :  { %v2767_v7 = vadd.f32 %v2766_v61, %v2497_v63  ;;  %v4049_v9 = vpop.f32.mrb[112].mxu0  ;;  %v2641_v59 = vmax.f32 %v2377_v52, 0.0 }
 0x1be   :  { %v1813_v11 = vpop.f32.mrb[113].mxu0  ;;  %v1822_v26 = vadd.f32 %v5162_v48, %v4049_v9  ;;  %v2930_v58 = vadd.f32 %v2929_v46, %v2640_v39 }
 0x1bf   :  { %v2768_v16 = vadd.f32 %v2767_v7, %v2498_v6  ;;  %v1814_v17 = vadd.f32 %v5162_v48, %v1813_v11  ;;  %v4050_v19 = vpop.f32.mrb[114].mxu0 }
 0x1c0   :  { %v1816_v20 = vpop.f32.mrb[115].mxu0  ;;  %v1825_v41 = vadd.f32 %v5162_v48, %v4050_v19  ;;  %v2502_v51 = vmax.f32 %v1822_v26, 0.0  ;;  %v2931_v3 = vadd.f32 %v2930_v58, %v2641_v59  ;;  %v5306_v59 = vld [vmem:[%s5465_s2] ss:$0 sm:$0xff] }
 0x1c1   :  { %v2500_v27 = vmax.f32 %v1814_v17, 0.0  ;;  %v2769_v28 = vadd.f32 %v2768_v16, %v2499_v34  ;;  %v1817_v29 = vadd.f32 %v5162_v48, %v1816_v20 }
 0x1c2   :  { %v2503_v61 = vmax.f32 %v1825_v41, 0.0  ;;  %v2932_v10 = vadd.f32 %v2931_v3, %v2642_v57 }
 0x1c3   :  { %v2770_v40 = vadd.f32 %v2769_v28, %v2500_v27  ;;  %v2501_v42 = vmax.f32 %v1817_v29, 0.0 }
 0x1c4   :  { %v5294_v34 = vadd.f32 %v2932_v10, %v2643_v2 }
 0x1c5   :  { %v2771_v44 = vadd.f32 %v2770_v40, %v2501_v42  ;;  %v4053_v53 = vpop.f32.mrb[116].mxu0 }
 0x1c6   :  { %v1829_v54 = vpop.f32.mrb[117].mxu0  ;;  %v1838_v4 = vadd.f32 %v5162_v48, %v4053_v53 }
 0x1c7   :  { %v2772_v62 = vadd.f32 %v2771_v44, %v2502_v51  ;;  %v1830_v63 = vadd.f32 %v5162_v48, %v1829_v54  ;;  %v4054_v0 = vpop.f32.mrb[118].mxu0 }
 0x1c8   :  { %v1832_v1 = vpop.f32.mrb[119].mxu0  ;;  %v1841_v12 = vadd.f32 %v5162_v48, %v4054_v0  ;;  %v2506_v16 = vmax.f32 %v1838_v4, 0.0 }
 0x1c9   :  { %v2504_v6 = vmax.f32 %v1830_v63, 0.0  ;;  %v2773_v7 = vadd.f32 %v2772_v62, %v2503_v61  ;;  %v1833_v9 = vadd.f32 %v5162_v48, %v1832_v1 }
 0x1ca   :  { %v2507_v21 = vmax.f32 %v1841_v12, 0.0 }
 0x1cb   :  { %v2774_v11 = vadd.f32 %v2773_v7, %v2504_v6  ;;  %v2505_v15 = vmax.f32 %v1833_v9, 0.0 }
 0x1cd   :  { %v2775_v17 = vadd.f32 %v2774_v11, %v2505_v15  ;;  %v4057_v19 = vpop.f32.mrb[120].mxu0 }
 0x1ce   :  { %v1845_v20 = vpop.f32.mrb[121].mxu0  ;;  %v1854_v28 = vadd.f32 %v5162_v48, %v4057_v19 }
 0x1cf   :  { %v2776_v22 = vadd.f32 %v2775_v17, %v2506_v16  ;;  %v1846_v23 = vadd.f32 %v5162_v48, %v1845_v20  ;;  %v4058_v26 = vpop.f32.mrb[122].mxu0 }
 0x1d0   :  { %v1848_v27 = vpop.f32.mrb[123].mxu0  ;;  %v1857_v37 = vadd.f32 %v5162_v48, %v4058_v26  ;;  %v2510_v40 = vmax.f32 %v1854_v28, 0.0 }
 0x1d1   :  { %v2508_v29 = vmax.f32 %v1846_v23, 0.0  ;;  %v2777_v31 = vadd.f32 %v2776_v22, %v2507_v21  ;;  %v1849_v33 = vadd.f32 %v5162_v48, %v1848_v27 }
 0x1d2   :  { %v2511_v39 = vmax.f32 %v1857_v37, 0.0 }
 0x1d3   :  { %v2778_v36 = vadd.f32 %v2777_v31, %v2508_v29  ;;  %v2509_v38 = vmax.f32 %v1849_v33, 0.0 }
 0x1d5   :  { %v2779_v41 = vadd.f32 %v2778_v36, %v2509_v38  ;;  %v4061_v42 = vpop.f32.mrb[124].mxu0 }
 0x1d6   :  { %v1861_v45 = vpop.f32.mrb[125].mxu0  ;;  %v1870_v44 = vadd.f32 %v5162_v48, %v4061_v42 }
 0x1d7   :  { %v2780_v46 = vadd.f32 %v2779_v41, %v2510_v40  ;;  %v1862_v49 = vadd.f32 %v5162_v48, %v1861_v45  ;;  %v4062_v52 = vpop.f32.mrb[126].mxu0 }
 0x1d8   :  { %v1864_v51 = vpop.f32.mrb[127].mxu0  ;;  %v1873_v61 = vadd.f32 %v5306_v59, %v4062_v52  ;;  %v2514_v63 = vmax.f32 %v1870_v44, 0.0 }
 0x1d9   :  { %v2512_v53 = vmax.f32 %v1862_v49, 0.0  ;;  %v2781_v54 = vadd.f32 %v2780_v46, %v2511_v39  ;;  %v1865_v57 = vadd.f32 %v5162_v48, %v1864_v51 }
 0x1da   :  { %v2515_v3 = vmax.f32 %v1873_v61, 0.0 }
 0x1db   :  { %v2782_v58 = vadd.f32 %v2781_v54, %v2512_v53  ;;  %v2513_v62 = vmax.f32 %v1865_v57, 0.0 }
 0x1dd   :  { %v2783_v0 = vadd.f32 %v2782_v58, %v2513_v62  ;;  %v4065_v1 = vpop.f32.mrb[128].mxu0 }
 0x1de   :  { %v1877_v2 = vpop.f32.mrb[129].mxu0  ;;  %v1886_v10 = vadd.f32 %v5306_v59, %v4065_v1 }
 0x1df   :  { %v2784_v4 = vadd.f32 %v2783_v0, %v2514_v63  ;;  %v1878_v6 = vadd.f32 %v5306_v59, %v1877_v2  ;;  %v4066_v7 = vpop.f32.mrb[130].mxu0 }
 0x1e0   :  { %v1880_v9 = vpop.f32.mrb[131].mxu0  ;;  %v1889_v16 = vadd.f32 %v5306_v59, %v4066_v7  ;;  %v2518_v20 = vmax.f32 %v1886_v10, 0.0 }
 0x1e1   :  { %v2785_v48 = vadd.f32 %v2784_v4, %v2515_v3  ;;  %v1881_v11 = vadd.f32 %v5306_v59, %v1880_v9  ;;  %v2516_v15 = vmax.f32 %v1878_v6, 0.0 }
 0x1e2   :  { %v2519_v27 = vmax.f32 %v1889_v16, 0.0 }
 0x1e3   :  { %v2786_v12 = vrot.slane %v2785_v48, 4  ;;  %v2517_v17 = vmax.f32 %v1881_v11, 0.0 }
 0x1e5   :  { %v2787_v19 = vadd.f32 %v2786_v12, %v2785_v48  ;;  %v2792_v21 = vadd.f32 %v2517_v17, %v2516_v15  ;;  %v4069_v22 = vpop.f32.mrb[132].mxu0 }
 0x1e6   :  { %v1893_v23 = vpop.f32.mrb[133].mxu0  ;;  %v1902_v33 = vadd.f32 %v5306_v59, %v4069_v22 }
 0x1e7   :  { %v2788_v26 = vrot.slane %v2787_v19, 2  ;;  %v2793_v28 = vadd.f32 %v2792_v21, %v2518_v20  ;;  %v1894_v29 = vadd.f32 %v5306_v59, %v1893_v23  ;;  %v4070_v31 = vpop.f32.mrb[134].mxu0 }
 0x1e8   :  { %v1896_v36 = vpop.f32.mrb[135].mxu0  ;;  %v1905_v39 = vadd.f32 %v5306_v59, %v4070_v31  ;;  %v2522_v52 = vmax.f32 %v1902_v33, 0.0 }
 0x1e9   :  { %v2789_v37 = vadd.f32 %v2788_v26, %v2787_v19  ;;  %v2520_v38 = vmax.f32 %v1894_v29, 0.0  ;;  %v2794_v40 = vadd.f32 %v2793_v28, %v2519_v27  ;;  %v1897_v41 = vadd.f32 %v5306_v59, %v1896_v36 }
 0x1ea   :  { %v2523_v57 = vmax.f32 %v1905_v39, 0.0 }
 0x1eb   :  { %v2790_v42 = vrot.slane %v2789_v37, 1  ;;  %v2795_v45 = vadd.f32 %v2794_v40, %v2520_v38  ;;  %v2521_v46 = vmax.f32 %v1897_v41, 0.0 }
 0x1ed   :  { %v2791_v49 = vadd.f32 %v2790_v42, %v2789_v37  ;;  %v2796_v51 = vadd.f32 %v2795_v45, %v2521_v46  ;;  %v4073_v44 = vpop.f32.mrb[136].mxu0 }
 0x1ee   :  { %v1909_v53 = vpop.f32.mrb[137].mxu0  ;;  %v1918_v63 = vadd.f32 %v5306_v59, %v4073_v44 }
 0x1ef   :  { %v2943_v54 = vmul.f32 0.00390625, %v2791_v49  ;;  %v2797_v58 = vadd.f32 %v2796_v51, %v2522_v52  ;;  %v1910_v61 = vadd.f32 %v5306_v59, %v1909_v53  ;;  %v4074_v62 = vpop.f32.mrb[138].mxu0 }
 0x1f0   :  { %v1912_v0 = vpop.f32.mrb[139].mxu0  ;;  %v1921_v9 = vadd.f32 %v5306_v59, %v4074_v62  ;;  %v2526_v11 = vmax.f32 %v1918_v63, 0.0  ;;  %v1961_v62 = vadd.f32 %v5306_v59, %v4966_v35  ;;  %v1977_v35 = vadd.f32 %v5306_v59, %v4991_v60 }
 0x1f1   :  { %v2951_v1 = vpack.c.bf16 %v2943_v54, %v2943_v54  ;;  %v2524_v2 = vmax.f32 %v1910_v61, 0.0  ;;  %v2798_v3 = vadd.f32 %v2797_v58, %v2523_v57  ;;  %v1913_v4 = vadd.f32 %v5306_v59, %v1912_v0 }
 0x1f2   :  { %v2527_v17 = vmax.f32 %v1921_v9, 0.0  ;;  %v1958_v57 = vadd.f32 %v5306_v59, %v4959_v30  ;;  %v1974_v30 = vadd.f32 %v5306_v59, %v4983_v55  ;;  %v1990_v55 = vadd.f32 %v5306_v59, %v5004_v13 }
 0x1f3   :  { %v2990_v6 = vunpack.c.l.b16 %v2951_v1  ;;  %v2799_v7 = vadd.f32 %v2798_v3, %v2524_v2  ;;  %v2525_v48 = vmax.f32 %v1913_v4, 0.0  ;;  %v1966_v1 = vadd.f32 %v5306_v59, %v4955_v25 }
 0x1f4   :  { %v2536_v2 = vmax.f32 %v1958_v57, 0.0  ;;  %v1969_v4 = vadd.f32 %v5306_v59, %v4963_v32  ;;  %v1982_v25 = vadd.f32 %v5306_v59, %v4979_v50  ;;  %v1985_v32 = vadd.f32 %v5306_v59, %v4986_v56 }
 0x1f5   :  { %v5322_v10 = vsel %vm2999_vm4, %v2990_v6, %v5272_v24  ;;  %v2800_v12 = vadd.f32 %v2799_v7, %v2525_v48  ;;  %v4077_v15 = vpop.f32.mrb[140].mxu0  ;;  %v2537_v6 = vmax.f32 %v1961_v62, 0.0  ;;  %v2538_v9 = vmax.f32 %v1966_v1, 0.0 }
 0x1f6   :  { %v1925_v16 = vpop.f32.mrb[141].mxu0  ;;  %v1934_v23 = vadd.f32 %v5306_v59, %v4077_v15  ;;  %v2540_v15 = vmax.f32 %v1974_v30, 0.0  ;;  %v1993_v50 = vadd.f32 %v5306_v59, %v5011_v18 }
 0x1f7   :  { %v2801_v19 = vadd.f32 %v2800_v12, %v2526_v11  ;;  %v1926_v20 = vadd.f32 %v5306_v59, %v1925_v16  ;;  %v4078_v21 = vpop.f32.mrb[142].mxu0  ;;  %v2539_v11 = vmax.f32 %v1969_v4, 0.0 }
 0x1f8   :  { %v1928_v22 = vpop.f32.mrb[143].mxu0  ;;  %v1937_v24 = vadd.f32 %v5306_v59, %v4078_v21  ;;  %v2530_v33 = vmax.f32 %v1934_v23, 0.0  ;;  %v2542_v21 = vmax.f32 %v1982_v25, 0.0  ;;  %v2934_v23 = vrot.slane %v5294_v34, 4 }
 0x1f9   :  { %v2528_v26 = vmax.f32 %v1926_v20, 0.0  ;;  %v2802_v27 = vadd.f32 %v2801_v19, %v2527_v17  ;;  %v1929_v28 = vadd.f32 %v5306_v59, %v1928_v22  ;;  %v2541_v17 = vmax.f32 %v1977_v35, 0.0 }
 0x1fa   :  { %v2531_v40 = vmax.f32 %v1937_v24, 0.0  ;;  %v2860_v20 = vrot.slane %v5133_v5, 4  ;;  %v2897_v22 = vrot.slane %v5217_v47, 4  ;;  %v2935_v13 = vadd.f32 %v2934_v23, %v5294_v34  ;;  %v4388_v23 = vld [vmem:[%s5468_s6 + $0x24] ss:$16 sps:$4 sm:$0xff]  }
 0x1fb   :  { %v2803_v29 = vadd.f32 %v2802_v27, %v2528_v26  ;;  %v2529_v31 = vmax.f32 %v1929_v28, 0.0  ;;  %v2543_v26 = vmax.f32 %v1985_v32, 0.0  ;;  %v1998_v28 = vadd.f32 %v5306_v59, %v5000_v8  ;;  %v4376_v32 = vld [vmem:[%s5467_s5 + $0x8] sm:$0xff]  }
 0x1fc   :  { %v2861_v56 = vadd.f32 %v2860_v20, %v5133_v5  ;;  %v2898_v24 = vadd.f32 %v2897_v22, %v5217_v47  ;;  %v4380_v20 = vld [vmem:[%s5467_s5 + $0x28] sm:$0xff]   ;;  %v4383_v22 = vld [vmem:[%s5468_s6] ss:$16 sps:$4 sm:$0xff]  }
 0x1fd   :  { %v2804_v36 = vadd.f32 %v2803_v29, %v2529_v31  ;;  %v4081_v37 = vpop.f32.mrb[144].mxu0  ;;  %v2544_v29 = vmax.f32 %v1990_v55, 0.0  ;;  %v4382_v55 = vld [vmem:[%s5467_s5 + $0x38] sm:$0xff]  }
 0x1fe   :  { %v1941_v38 = vpop.f32.mrb[145].mxu0  ;;  %v1950_v46 = vadd.f32 %v5306_v59, %v4081_v37  ;;  %v2899_v18 = vrot.slane %v2898_v24, 2 }
 0x1ff   :  { %v2805_v41 = vadd.f32 %v2804_v36, %v2530_v33  ;;  %v1942_v42 = vadd.f32 %v5306_v59, %v1941_v38  ;;  %v4082_v45 = vpop.f32.mrb[146].mxu0  ;;  %v2001_v33 = vadd.f32 %v5306_v59, %v5007_v14  ;;  %v2545_v36 = vmax.f32 %v1993_v50, 0.0  ;;  %v4391_v50 = vld [vmem:[%s5468_s6 + $0x44] ss:$16 sps:$4 sm:$0xff]  }
 0x200   :  { %v1944_v39 = vpop.f32.mrb[147].mxu0  ;;  %v1953_v53 = vadd.f32 %v5306_v59, %v4082_v45  ;;  %v2534_v58 = vmax.f32 %v1950_v46, 0.0  ;;  %v2862_v38 = vrot.slane %v2861_v56, 2  ;;  %v2900_v8 = vadd.f32 %v2899_v18, %v2898_v24 }
 0x201   :  { %v2532_v49 = vmax.f32 %v1942_v42, 0.0  ;;  %v2806_v52 = vadd.f32 %v2805_v41, %v2531_v40  ;;  %v1945_v51 = vadd.f32 %v5306_v59, %v1944_v39  ;;  %v2546_v40 = vmax.f32 %v1998_v28, 0.0  ;;  %v4392_v28 = vld [vmem:[%s5468_s6 + $0x60] ss:$16 sps:$4 sm:$0xff]  }
 0x202   :  { %v2535_v63 = vmax.f32 %v1953_v53, 0.0  ;;  %v2936_v42 = vrot.slane %v2935_v13, 2  ;;  %v2547_v5 = vmax.f32 %v2001_v33, 0.0  ;;  %v2863_v39 = vadd.f32 %v2862_v38, %v2861_v56  ;;  %v4394_v56 = vld [vmem:[%s5468_s6 + $0x64] ss:$16 sps:$4 sm:$0xff]  }
 0x203   :  { %v2807_v44 = vadd.f32 %v2806_v52, %v2532_v49  ;;  %v2533_v54 = vmax.f32 %v1945_v51, 0.0  ;;  %v2901_v51 = vrot.slane %v2900_v8, 1 }
 0x204   :  { %v2937_v49 = vadd.f32 %v2936_v42, %v2935_v13  ;;  %v2864_v52 = vrot.slane %v2863_v39, 1 }
 0x205   :  { %v2808_v61 = vadd.f32 %v2807_v44, %v2533_v54  ;;  %v2902_v59 = vadd.f32 %v2901_v51, %v2900_v8  ;;  %v3748_v8 = vld [vmem:[%s5469_s4] ss:$0 sm:$0xff] }
 0x206   :  { %v2938_v44 = vrot.slane %v2937_v49, 1  ;;  %v2865_v14 = vadd.f32 %v2864_v52, %v2863_v39  ;;  %v4406_v39 = vld [vmem:[%s5468_s6 + $0x6c] ss:$16 sps:$4 sm:$0xff]  }
 0x207   :  { %v2809_v0 = vadd.f32 %v2808_v61, %v2534_v58  ;;  %v2946_v62 = vmul.f32 0.00390625, %v2902_v59 }
 0x208   :  { %v2939_v57 = vadd.f32 %v2938_v44, %v2937_v49  ;;  %v2945_v61 = vmul.f32 0.00390625, %v2865_v14 }
 0x209   :  { %v2810_v3 = vadd.f32 %v2809_v0, %v2535_v63 }
 0x20a   :  { %v2947_v0 = vmul.f32 0.00390625, %v2939_v57 }
 0x20b   :  { %v2811_v7 = vadd.f32 %v2810_v3, %v2536_v2  ;;  %v2953_v2 = vpack.c.bf16 %v2945_v61, %v2945_v61  ;;  %v2954_v3 = vpack.c.bf16 %v2946_v62, %v2946_v62 }
 0x20d   :  { %v2812_v48 = vadd.f32 %v2811_v7, %v2537_v6  ;;  %v2955_v6 = vpack.c.bf16 %v2947_v0, %v2947_v0  ;;  %v2993_v30 = vunpack.c.l.b16 %v2954_v3 }
 0x20f   :  { %v2813_v12 = vadd.f32 %v2812_v48, %v2538_v9  ;;  %v2992_v9 = vunpack.c.l.b16 %v2953_v2 }
 0x211   :  { %v2814_v16 = vadd.f32 %v2813_v12, %v2539_v11  ;;  %v2994_v11 = vunpack.c.l.b16 %v2955_v6 }
 0x213   :  { %v2815_v19 = vadd.f32 %v2814_v16, %v2540_v15  ;;  %v4375_v15 = vld [vmem:[%s5467_s5] sm:$0xff]  }
 0x215   :  { %v2816_v60 = vadd.f32 %v2815_v19, %v2541_v17  ;;  %v4378_v17 = vld [vmem:[%s5467_s5 + $0x18] sm:$0xff]   ;;  %v4379_v19 = vld [vmem:[%s5467_s5 + $0x20] sm:$0xff]  }
 0x217   :  { %v2817_v27 = vadd.f32 %v2816_v60, %v2542_v21  ;;  %v4381_v21 = vld [vmem:[%s5467_s5 + $0x30] sm:$0xff]  }
 0x218   :  { %v4385_v60 = vld [vmem:[%s5468_s6 + $0x4] ss:$16 sps:$4 sm:$0xff]  }
 0x219   :  { %v2818_v31 = vadd.f32 %v2817_v27, %v2543_v26  ;;  %v4386_v26 = vld [vmem:[%s5468_s6 + $0x20] ss:$16 sps:$4 sm:$0xff]  }
 0x21a   :  { %v4389_v27 = vld [vmem:[%s5468_s6 + $0x40] ss:$16 sps:$4 sm:$0xff]  }
 0x21b   :  { %v2819_v37 = vadd.f32 %v2818_v31, %v2544_v29  ;;  %v4397_v29 = vld [vmem:[%s5468_s6 + $0xc] ss:$16 sps:$4 sm:$0xff]  }
 0x21d   :  { %v2820_v41 = vadd.f32 %v2819_v37, %v2545_v36  ;;  %v4395_v36 = vld [vmem:[%s5468_s6 + $0x8] ss:$16 sps:$4 sm:$0xff]   ;;  %v4400_v37 = vld [vmem:[%s5468_s6 + $0x2c] ss:$16 sps:$4 sm:$0xff]  }
 0x21f   :  { %v2821_v45 = vadd.f32 %v2820_v41, %v2546_v40  ;;  %v4398_v41 = vld [vmem:[%s5468_s6 + $0x28] ss:$16 sps:$4 sm:$0xff]  }
 0x221   :  { %v2822_v46 = vadd.f32 %v2821_v45, %v2547_v5  ;;  %v4403_v5 = vld [vmem:[%s5468_s6 + $0x4c] ss:$16 sps:$4 sm:$0xff]   ;;  %v4401_v45 = vld [vmem:[%s5468_s6 + $0x48] ss:$16 sps:$4 sm:$0xff]  }
 0x223   :  { %v2823_v47 = vrot.slane %v2822_v46, 4 }
 0x225   :  { %v2824_v34 = vadd.f32 %v2823_v47, %v2822_v46 }
 0x227   :  { %v2825_v53 = vrot.slane %v2824_v34, 2 }
 0x229   :  { %v2826_v54 = vadd.f32 %v2825_v53, %v2824_v34 }
 0x22b   :  { %v2827_v58 = vrot.slane %v2826_v54, 1 }
 0x22d   :  { %v2828_v63 = vadd.f32 %v2827_v58, %v2826_v54 }
 0x22f   :  { %v2944_v1 = vmul.f32 0.00390625, %v2828_v63 }
 0x231   :  { %v2952_v4 = vpack.c.bf16 %v2944_v1, %v2944_v1 }
 0x233   :  { %v2991_v7 = vunpack.c.l.b16 %v2952_v4 }
 0x235   :  { %v3002_v48 = vsel %vm3001_vm5, %v2991_v7, %v5322_v10  ;;  %v4377_v10 = vld [vmem:[%s5467_s5 + $0x10] sm:$0xff]  }
 0x236   :  { %v3004_v35 = vsel %vm3003_vm6, %v2992_v9, %v3002_v48 }
 0x237   :  { %v3006_v12 = vsel %vm3005_vm7, %v2993_v30, %v3004_v35 }
 0x238   :  { %v3008_v25 = vsel %vm3007_vm8, %v2994_v11, %v3006_v12 }
 0x239   :  { %v3009_v16 = vpack.c.b16 %v3008_v25, %v3008_v25 }
 0x23b   :  { %4208 = vmatmul.mubr.bf16.vlgmr.msra.gmra.mrb[108].mxu1 %v3009_v16 }
 0x23c   :  { %4212 = vmatpush3.bf16.msra.mxu1 %v4375_v15  ;;  %4227 = vmatprep.mubr.msk.bf16.mxu1 %vm4436_vm2, %v4435_v43 }
 0x23d   :  { %4213 = vmatprep.subr.bf16.mxu1 %v4435_v43 }
 0x240   :  { %4214 = vmatpush3.bf16.msra.mxu1 %v4376_v32 }
 0x241   :  { %4215 = vmatprep.subr.bf16.mxu1 %v4435_v43 }
 0x244   :  { %4216 = vmatpush3.bf16.msra.mxu1 %v4377_v10 }
 0x245   :  { %4217 = vmatprep.subr.bf16.mxu1 %v4435_v43 }
 0x248   :  { %4218 = vmatpush3.bf16.msra.mxu1 %v4378_v17 }
 0x249   :  { %4219 = vmatprep.subr.bf16.mxu1 %v4435_v43 }
 0x24c   :  { %4220 = vmatpush3.bf16.msra.mxu1 %v4379_v19 }
 0x24d   :  { %4221 = vmatprep.subr.bf16.mxu1 %v4435_v43 }
 0x250   :  { %4222 = vmatpush3.bf16.msra.mxu1 %v4380_v20 }
 0x251   :  { %4223 = vmatprep.subr.bf16.mxu1 %v4435_v43 }
 0x254   :  { %4224 = vmatpush3.bf16.msra.mxu1 %v4381_v21 }
 0x255   :  { %4225 = vmatprep.subr.bf16.mxu1 %v4435_v43 }
 0x258   :  { %4226 = vmatpush3.bf16.msra.mxu1 %v4382_v55 }
 0x259   :  { %3303 = vmatprep.subr.bf16.mxu1 %v4385_v60 }
 0x25b   :  { %4228 = vmatmul.mubr.bf16.vlgmr.msra.gmra.mrb[112].mxu1 %v3009_v16 }
 0x25c   :  { %3335 = vmatprep.mubr.f32.mxu1 %v4435_v43  ;;  %3304 = vmatpush1.bf16.msra.mxu1 %v4383_v22 }
 0x25d   :  { %3305 = vmatprep.subr.bf16.mxu1 %v4388_v23 }
 0x260   :  { %3306 = vmatpush1.bf16.msra.mxu1 %v4386_v26 }
 0x261   :  { %3307 = vmatprep.subr.bf16.mxu1 %v4391_v50 }
 0x264   :  { %3308 = vmatpush1.bf16.msra.mxu1 %v4389_v27 }
 0x265   :  { %3309 = vmatprep.subr.bf16.mxu1 %v4394_v56 }
 0x268   :  { %3310 = vmatpush1.bf16.msra.mxu1 %v4392_v28 }
 0x269   :  { %3342 = vmatprep.subr.bf16.mxu1 %v4397_v29 }
 0x30e   :  { %v3093_v24 = vpop.f32.mrb[108].mxu1 }
 0x30f   :  { %v4209_v31 = vpop.f32.mrb[109].mxu1  ;;  %v3094_v46 = vadd.f32 %v3748_v8, %v3093_v24 }
 0x310   :  { %v3096_v13 = vpop.f32.mrb[110].mxu1 }
 0x311   :  { %v4210_v33 = vpop.f32.mrb[111].mxu1 }
 0x32e   :  { %v3197_v38 = vpop.f32.mrb[112].mxu1 }
 0x32f   :  { %v4229_v40 = vpop.f32.mrb[113].mxu1  ;;  %3781 = vmatmul.mubr.msk.f32.vlgmr.msra.gmra.mrb[116].mxu1 %vm3299_vm9, %v3197_v38 }
 0x330   :  { %3343 = vmatpush1.bf16.msra.mxu1 %v4395_v36  ;;  %v3200_v18 = vpop.f32.mrb[114].mxu1  ;;  %3374 = vmatprep.mubr.f32.mxu1 %v4435_v43  ;;  %v4404_v43 = vld [vmem:[%s5468_s6 + $0x68] ss:$16 sps:$4 sm:$0xff]  }
 0x331   :  { %v4230_v42 = vpop.f32.mrb[115].mxu1  ;;  %3344 = vmatprep.subr.bf16.mxu1 %v4400_v37 }
 0x334   :  { %3345 = vmatpush1.bf16.msra.mxu1 %v4398_v41 }
 0x335   :  { %3346 = vmatprep.subr.bf16.mxu1 %v4403_v5 }
 0x338   :  { %3347 = vmatpush1.bf16.msra.mxu1 %v4401_v45 }
 0x339   :  { %3348 = vmatprep.subr.bf16.mxu1 %v4406_v39 }
 0x33c   :  { %3349 = vmatpush1.bf16.msra.mxu1 %v4404_v43 }
 0x33f   :  { %3782 = vmatmul.mubr.msk.f32.vlgmr.msra.gmra.mrb[118].mxu1 %vm3299_vm9, %v3197_v38 }
 0x402   :  { %v3337_v49 = vpop.f32.mrb[116].mxu1 }
 0x403   :  { %v3381_v47 = vadd.f32 %v3337_v49, %v3094_v46  ;;  %v3339_v52 = vpop.f32.mrb[117].mxu1 }
 0x404   :  { %v3398_v51 = vadd.f32 %v3339_v52, %v3094_v46 }
 0x405   :  { %3382 = vmax.xlane.f32.xlu0 %v3381_v47 }
 0x406   :  { %v3415_v44 = vadd.f32 %v3398_v51, %v3381_v47 }
 0x409   :  { %3399 = vmax.xlane.f32.xlu0 %v3398_v51 }
 0x412   :  { %v3376_v34 = vpop.f32.mrb[118].mxu1 }
 0x413   :  { %v3417_v53 = vadd.f32 %v3376_v34, %v3094_v46  ;;  %v3378_v14 = vpop.f32.mrb[119].mxu1 }
 0x414   :  { %v3436_v59 = vadd.f32 %v3378_v14, %v3094_v46 }
 0x415   :  { %v3434_v54 = vadd.f32 %v3417_v53, %v3415_v44  ;;  %3418 = vmax.xlane.f32.xlu1 %v3417_v53 }
 0x417   :  { %v3453_v57 = vadd.f32 %v3436_v59, %v3434_v54 }
 0x419   :  { %v3480_v58 = vmul.f32 0.25, %v3453_v57  ;;  %3437 = vmax.xlane.f32.xlu1 %v3436_v59 }
 0x41b   :  { %3481 = vst [vmem:[%s5470_s7] sm:$0xff] %v3480_v58 }
 0x492   :  { %v3383_v61 = vpop.xlane.xlu0 %3382 }
 0x493   :  { %v3384_v62 = vsub.f32 %v3381_v47, %v3383_v61 }
 0x495   :  { %v3385_v63 = vmul.f32 1.442695, %v3384_v62 }
 0x496   :  { %v3400_v0 = vpop.xlane.xlu0 %3399 }
 0x497   :  { %4407 = vpow2.f32 %v3385_v63  ;;  %v3401_v1 = vsub.f32 %v3398_v51, %v3400_v0 }
 0x499   :  { %v3402_v2 = vmul.f32 1.442695, %v3401_v1 }
 0x49b   :  { %4409 = vpow2.f32 %v3402_v2 }
 0x4a1   :  { %v4408_v3 = vpop.eup %4407 }
 0x4a2   :  { %v3419_v4 = vpop.xlane.xlu1 %3418  ;;  %3387 = vadd.xlane.f32.xlu0 %v4408_v3 }
 0x4a3   :  { %v3420_v6 = vsub.f32 %v3417_v53, %v3419_v4 }
 0x4a5   :  { %v4410_v7 = vpop.eup %4409  ;;  %v3421_v9 = vmul.f32 1.442695, %v3420_v6 }
 0x4a6   :  { %v3438_v30 = vpop.xlane.xlu1 %3437  ;;  %3404 = vadd.xlane.f32.xlu1 %v4410_v7 }
 0x4a7   :  { %4411 = vpow2.f32 %v3421_v9  ;;  %v3439_v48 = vsub.f32 %v3436_v59, %v3438_v30 }
 0x4a9   :  { %v3440_v11 = vmul.f32 1.442695, %v3439_v48 }
 0x4ab   :  { %4413 = vpow2.f32 %v3440_v11 }
 0x4b1   :  { %v4412_v35 = vpop.eup %4411 }
 0x4b2   :  { %3423 = vadd.xlane.f32.xlu0 %v4412_v35 }
 0x4b5   :  { %v4414_v12 = vpop.eup %4413 }
 0x4b6   :  { %3442 = vadd.xlane.f32.xlu1 %v4414_v12 }
 0x52f   :  { %v3388_v25 = vpop.xlane.xlu0 %3387 }
 0x530   :  { %4415 = vrcp.f32 %v3388_v25 }
 0x531   :  { %4417 = vlog2.f32 %v3388_v25 }
 0x533   :  { %v3405_v15 = vpop.xlane.xlu1 %3404 }
 0x534   :  { %4419 = vrcp.f32 %v3405_v15 }
 0x535   :  { %4421 = vlog2.f32 %v3405_v15 }
 0x53a   :  { %v4416_v16 = vpop.eup %4415 }
 0x53b   :  { %v4418_v32 = vpop.eup %4417  ;;  %v3390_v19 = vmul.f32 %v4416_v16, %v4408_v3 }
 0x53c   :  { %v3392_v10 = vmul.f32 0.6931472, %v4418_v32 }
 0x53e   :  { %v4420_v17 = vpop.eup %4419  ;;  %v3393_v20 = vsub.f32 %v3384_v62, %v3392_v10 }
 0x53f   :  { %v4422_v21 = vpop.eup %4421  ;;  %v3424_v55 = vpop.xlane.xlu0 %3423  ;;  %v3407_v23 = vmul.f32 %v4420_v17, %v4410_v7 }
 0x540   :  { %v3409_v22 = vmul.f32 0.6931472, %v4422_v21  ;;  %4423 = vrcp.f32 %v3424_v55  ;;  %v3394_v60 = vmul.f32 %v3393_v20, %v3390_v19 }
 0x541   :  { %4425 = vlog2.f32 %v3424_v55  ;;  %v3455_v31 = vadd.f32 %v3407_v23, %v3390_v19 }
 0x542   :  { %3395 = vadd.xlane.f32.xlu0 %v3394_v60  ;;  %v3410_v26 = vsub.f32 %v3401_v1, %v3409_v22 }
 0x543   :  { %v3443_v50 = vpop.xlane.xlu1 %3442 }
 0x544   :  { %4427 = vrcp.f32 %v3443_v50  ;;  %v3411_v27 = vmul.f32 %v3410_v26, %v3407_v23 }
 0x545   :  { %4429 = vlog2.f32 %v3443_v50 }
 0x546   :  { %3412 = vadd.xlane.f32.xlu1 %v3411_v27 }
 0x54a   :  { %v4424_v56 = vpop.eup %4423 }
 0x54b   :  { %v4426_v28 = vpop.eup %4425  ;;  %v3426_v29 = vmul.f32 %v4424_v56, %v4412_v35 }
 0x54c   :  { %v3428_v24 = vmul.f32 0.6931472, %v4426_v28 }
 0x54d   :  { %v3456_v37 = vadd.f32 %v3455_v31, %v3426_v29 }
 0x54e   :  { %v4428_v13 = vpop.eup %4427  ;;  %v3429_v33 = vsub.f32 %v3420_v6, %v3428_v24 }
 0x54f   :  { %v4430_v36 = vpop.eup %4429  ;;  %v3445_v38 = vmul.f32 %v4428_v13, %v4414_v12 }
 0x550   :  { %v3447_v40 = vmul.f32 0.6931472, %v4430_v36  ;;  %v3430_v18 = vmul.f32 %v3429_v33, %v3426_v29 }
 0x551   :  { %v3457_v41 = vadd.f32 %v3456_v37, %v3445_v38 }
 0x552   :  { %3431 = vadd.xlane.f32.xlu0 %v3430_v18  ;;  %v3448_v42 = vsub.f32 %v3439_v48, %v3447_v40 }
 0x553   :  { %v3458_v5 = vmul.f32 0.25, %v3457_v41 }
 0x554   :  { %v3449_v45 = vmul.f32 %v3448_v42, %v3445_v38 }
 0x555   :  { %v3459_v39 = vsub.f32 %v3390_v19, %v3458_v5  ;;  %v3462_v43 = vsub.f32 %v3407_v23, %v3458_v5  ;;  %v3465_v8 = vsub.f32 %v3426_v29, %v3458_v5  ;;  %3482 = vst [vmem:[%s5470_s7 + $0x8] sm:$0xff] %v3458_v5  ;;  %v3468_v47 = vsub.f32 %v3445_v38, %v3458_v5 }
 0x556   :  { %3450 = vadd.xlane.f32.xlu1 %v3449_v45 }
 0x557   :  { %v3460_v46 = vmul.f32 %v3459_v39, %v3459_v39  ;;  %v3463_v49 = vmul.f32 %v3462_v43, %v3462_v43  ;;  %v3466_v51 = vmul.f32 %v3465_v8, %v3465_v8  ;;  %v3469_v44 = vmul.f32 %v3468_v47, %v3468_v47 }
 0x559   :  { %v3464_v52 = vadd.f32 %v3463_v49, %v3460_v46 }
 0x55b   :  { %v3467_v34 = vadd.f32 %v3466_v51, %v3464_v52 }
 0x55d   :  { %v3470_v53 = vadd.f32 %v3469_v44, %v3467_v34 }
 0x55f   :  { %v3471_v14 = vmul.f32 0.33333334, %v3470_v53 }
 0x561   :  { %4431 = vrsqrt.f32 %v3471_v14  ;;  %vm3474_vm10 = vcmp.eq.f32.partialorder %v3471_v14, inf  ;;  %v3477_v57 = vand.u32 2147483648, %v3471_v14  ;;  %vm3476_vm11 = vcmp.eq.f32.partialorder %v3471_v14, 0.0 }
 0x56b   :  { %v4432_v59 = vpop.eup %4431 }
 0x56c   :  { %v3473_v54 = vmul.f32 %v4432_v59, %v3471_v14 }
 0x56e   :  { %v3475_v58 = vsel %vm3474_vm10, %v3471_v14, %v3473_v54 }
 0x56f   :  { %v3478_v61 = vsel %vm3476_vm11, %v3477_v57, %v3475_v58 }
 0x570   :  { %3483 = vst [vmem:[%s5470_s7 + $0x10] sm:$0xff] %v3478_v61 }
 0x5cf   :  { %v3396_v62 = vpop.xlane.xlu0 %3395 }
 0x5d0   :  { %v3397_v2 = vsub.f32 0.0, %v3396_v62 }
 0x5d3   :  { %v3413_v63 = vpop.xlane.xlu1 %3412 }
 0x5d4   :  { %v3414_v0 = vsub.f32 0.0, %v3413_v63 }
 0x5d6   :  { %v3416_v4 = vadd.f32 %v3414_v0, %v3397_v2 }
 0x5df   :  { %v3432_v1 = vpop.xlane.xlu0 %3431 }
 0x5e0   :  { %v3433_v3 = vsub.f32 0.0, %v3432_v1 }
 0x5e2   :  { %v3435_v7 = vadd.f32 %v3433_v3, %v3416_v4 }
 0x5e3   :  { %v3451_v6 = vpop.xlane.xlu1 %3450 }
 0x5e4   :  { %v3452_v9 = vsub.f32 0.0, %v3451_v6 }
 0x5e6   :  { %v3454_v30 = vadd.f32 %v3452_v9, %v3435_v7 }
 0x5e8   :  { %v3479_v48 = vmul.f32 0.25, %v3454_v30 }
 0x5ea   :  { %3484 = vst [vmem:[%s5470_s7 + $0x18] sm:$0xff] %v3479_v48 }

</bundles_post_ra>
